<compile_context>
chip_gen: v7x
topology: tpu7x:2x2x1
jax: 0.10.0
libtpu: 0.0.40
codegen_flags: <defaults>
</compile_context>

<pallas_src>
import functools
import math

import jax
import jax.numpy as jnp
from jax.experimental import pallas as pl
from jax.experimental.pallas import tpu as pltpu


# ----------------------------------------------------------------------------
# Fused per-layer kernel.  grid = (batch_blocks, layers); layer axis is "arbitrary".
# ----------------------------------------------------------------------------
def _stack_kernel(x_in_ref, cv_ref, ck_ref, cos_ref, sin_ref,
                  lng_ref, lnb_ref,
                  sa_wq_ref, sa_bq_ref, sa_wk_ref, sa_bk_ref,
                  sa_wv_ref, sa_bv_ref, sa_wo_ref, sa_bo_ref,
                  ca_wq_ref, ca_bq_ref, ca_wk_ref, ca_bk_ref,
                  ca_wv_ref, ca_bv_ref, ca_wo_ref, ca_bo_ref,
                  ff_w1_ref, ff_b1_ref, ff_w2_ref, ff_b2_ref,
                  film_ref,
                  out_ref, *, bb, t_len, s_len, dim, heads):
    head_dim = dim // heads
    scale = 1.0 / math.sqrt(head_dim)
    m = bb * t_len
    ms = bb * s_len
    layer = pl.program_id(1)

    # out_ref is the resident activation state across the layer axis (its block index is
    # constant over layers); initialise it from the input on the first layer of each block.
    @pl.when(layer == 0)
    def _():
        out_ref[...] = x_in_ref[...]

    x = out_ref[...].reshape(m, dim)                   # running (bb*T, D) state, f32
    cond_v = cv_ref[...].reshape(ms, dim)              # cross-attn values
    cond_k = ck_ref[...].reshape(ms, dim)              # rotary(cond) keys (hoisted in wrapper)

    # per-layer constants (hoisted above all three blocks)
    cos2 = jnp.tile(cos_ref[...], (bb, 1))             # (T, D) table broadcast over batch
    sin2 = jnp.tile(sin_ref[...], (bb, 1))
    lane = jax.lax.broadcasted_iota(jnp.int32, (m, dim), 1)
    even = (lane & 1) == 0                              # interleaved-rotary parity mask
    g_all = lng_ref[0]                                  # (3, D) LayerNorm gammas
    b_all = lnb_ref[0]                                  # (3, D) LayerNorm betas

    def layer_norm(z, i):
        mu = jnp.mean(z, axis=-1, keepdims=True)
        zc = z - mu
        var = jnp.mean(zc * zc, axis=-1, keepdims=True)
        return zc * jax.lax.rsqrt(var + 1e-5) * g_all[i:i + 1, :] + b_all[i:i + 1, :]

    def mm(z, w_ref, b_ref):
        w = w_ref[0]                                    # bf16 weights, f32 accumulation
        return jnp.dot(z.astype(w.dtype), w, preferred_element_type=jnp.float32) + b_ref[0]

    def rope(z):
        # interleaved pair rotation r[2i] = -z[2i+1], r[2i+1] = z[2i] built from two XLU
        # lane rolls + a parity select (no (D, D) pair-swap matmul on the MXU).
        dn = pltpu.roll(z, dim - 1, axis=1)             # dn[j] = z[j+1]  (roll by -1)
        up = pltpu.roll(z, 1, axis=1)                   # up[j] = z[j-1]
        return z * cos2 + jnp.where(even, -dn, up) * sin2

    def film(i, y2):
        # FiLM scale/shift are constant over time: broadcast (bb, D) over T in-kernel.
        sc = film_ref[0, :, i, 0, :]                    # (bb, D)
        sh = film_ref[0, :, i, 1, :]
        y3 = y2.reshape(bb, t_len, dim)
        return ((sc + 1.0)[:, None, :] * y3 + sh[:, None, :]).reshape(m, dim)

    def mha(q_in, k_in, v_in, tq, tk, wo_ref, bo_ref):
        # Heads are a fully-unrolled static Python loop with single-batch-dim einsums
        # (proven Mosaic lowering); a single 'bqhd,bkhd->bhqk' multi-batch-dim dot_general
        # is not reliably supported.  Score / value matmuls run in bf16 with f32 accumulation.
        q3 = q_in.reshape(bb, tq, dim).astype(jnp.bfloat16)
        k3 = k_in.reshape(bb, tk, dim).astype(jnp.bfloat16)
        v3 = v_in.reshape(bb, tk, dim).astype(jnp.bfloat16)
        outs = []
        for h in range(heads):
            lo, hi = h * head_dim, (h + 1) * head_dim
            s = jnp.einsum("bqd,bkd->bqk", q3[:, :, lo:hi], k3[:, :, lo:hi],
                           preferred_element_type=jnp.float32) * scale
            s = s - jnp.max(s, axis=-1, keepdims=True)
            p = jnp.exp(s)
            p = p * pl.reciprocal(jnp.sum(p, axis=-1, keepdims=True), approx=True)
            outs.append(jnp.einsum("bqk,bkd->bqd", p.astype(jnp.bfloat16),
                                   v3[:, :, lo:hi], preferred_element_type=jnp.float32))
        o = jnp.concatenate(outs, axis=-1).reshape(bb * tq, dim)
        return mm(o, wo_ref, bo_ref)

    # --- self-attention block (rotary q/k, plain v), FiLM-modulated residual ----------
    xn = layer_norm(x, 0)
    qk = rope(xn)
    q_sa = mm(qk, sa_wq_ref, sa_bq_ref)
    k_sa = mm(qk, sa_wk_ref, sa_bk_ref)
    v_sa = mm(xn, sa_wv_ref, sa_bv_ref)
    a1 = mha(q_sa, k_sa, v_sa, t_len, t_len, sa_wo_ref, sa_bo_ref)
    x = x + film(0, a1)

    # --- cross-attention block (q = rotary(norm(x)), k = rotary(cond), v = cond) ------
    xn = layer_norm(x, 1)
    q_ca = mm(rope(xn), ca_wq_ref, ca_bq_ref)
    k_ca = mm(cond_k, ca_wk_ref, ca_bk_ref)
    v_ca = mm(cond_v, ca_wv_ref, ca_bv_ref)
    a2 = mha(q_ca, k_ca, v_ca, t_len, s_len, ca_wo_ref, ca_bo_ref)
    x = x + film(1, a2)

    # --- feed-forward block -------------------------------------------------------------
    xn = layer_norm(x, 2)
    h1 = mm(xn, ff_w1_ref, ff_b1_ref)
    # TODO(synk): exact erf-GELU (F.gelu default) is not guaranteed to lower in Mosaic; the
    # tanh approximation is used as the in-kernel activation.
    h1 = 0.5 * h1 * (1.0 + jnp.tanh(0.7978845608028654 * (h1 + 0.044715 * h1 * h1 * h1)))
    f3 = mm(h1, ff_w2_ref, ff_b2_ref)
    x = x + film(2, f3)

    out_ref[...] = x.reshape(bb, t_len, dim)


# ----------------------------------------------------------------------------
# Hoisted rotary constants (interleaved-pair convention)
# ----------------------------------------------------------------------------
def _rotary_tables(n, d):
    inv = 1.0 / (10000.0 ** (jnp.arange(0, d, 2, dtype=jnp.float32) / d))
    fr = jnp.arange(n, dtype=jnp.float32)[:, None] * inv[None, :]
    fr = jnp.repeat(fr, 2, axis=-1)
    return jnp.cos(fr), jnp.sin(fr)


def _rotate_interleaved(z, cos, sin):
    # wrapper-side (XLA) interleaved rotary, used once for the hoisted rotary(cond)
    zp = z.reshape(*z.shape[:-1], z.shape[-1] // 2, 2)
    zs = jnp.stack((-zp[..., 1], zp[..., 0]), axis=-1).reshape(z.shape)
    return z * cos + zs * sin


# ----------------------------------------------------------------------------
# DecoderLayerStack forward: x = layer(x, cond, t) for every layer, fused in one call
# ----------------------------------------------------------------------------
def decoder_layer_stack_forward(params, x, cond, t, *, num_heads, batch_block=None):
    bsz, t_len, dim = x.shape
    s_len = cond.shape[1]
    n_layers = params["ln_g"].shape[0]
    ff = params["ff_w1"].shape[-1]
    assert dim % num_heads == 0
    if batch_block is None:
        # two batch blocks -> leading "parallel" grid axis feeds both v7x TensorCores
        batch_block = bsz // 2 if (bsz % 2 == 0 and bsz >= 2) else bsz
    bb = batch_block
    assert bsz % bb == 0

    x = x.astype(jnp.float32)
    cond = cond.astype(jnp.float32)
    t = t.astype(jnp.float32)

    # rotary tables passed once (NOT tiled over batch); rotary(cond) hoisted entirely
    cos_t, sin_t = _rotary_tables(t_len, dim)
    cos_s, sin_s = _rotary_tables(s_len, dim)
    cond_rot = _rotate_interleaved(cond, cos_s[None], sin_s[None])

    # All DenseFiLM projections (Mish -> Linear, 3 films x L layers) as one fused XLA matmul
    # (runs once per forward; at production L*6*D columns the weight cannot live in VMEM).
    # Output stays un-broadcast over T: (L, B, 3(films), 2(scale|shift), D).
    tm = t * jnp.tanh(jax.nn.softplus(t))
    ss = tm @ params["film_w"].astype(jnp.float32) + params["film_b"].astype(jnp.float32)
    ss = ss.reshape(bsz, n_layers, 3, 2, dim).transpose(1, 0, 2, 3, 4)

    # Stacked per-layer parameters streamed one layer per grid step; matmul weights are
    # stored/streamed in bf16 (f32 MXU accumulation in-kernel), small affine params stay f32.
    bf16 = {"sa_wq", "sa_wk", "sa_wv", "sa_wo", "ca_wq", "ca_wk", "ca_wv", "ca_wo",
            "ff_w1", "ff_w2"}
    stacked_names = ("ln_g", "ln_b",
                     "sa_wq", "sa_bq", "sa_wk", "sa_bk", "sa_wv", "sa_bv", "sa_wo", "sa_bo",
                     "ca_wq", "ca_bq", "ca_wk", "ca_bk", "ca_wv", "ca_bv", "ca_wo", "ca_bo",
                     "ff_w1", "ff_b1", "ff_w2", "ff_b2")
    stacked = [params[k].astype(jnp.bfloat16 if k in bf16 else jnp.float32)
               for k in stacked_names]

    def batch_spec(tail):
        z = (0,) * len(tail)
        return pl.BlockSpec((bb,) + tail, lambda b, l, _z=z: (b,) + _z)

    def const_spec(shape):
        z = (0,) * len(shape)
        return pl.BlockSpec(shape, lambda b, l, _z=z: _z)

    def layer_spec(arr):
        z = (0,) * (arr.ndim - 1)
        return pl.BlockSpec((1,) + arr.shape[1:], lambda b, l, _z=z: (l,) + _z)

    film_spec = pl.BlockSpec((1, bb, 3, 2, dim), lambda b, l: (l, b, 0, 0, 0))

    # Explicit scoped-VMEM budget sized from the real working set (double-buffered per-layer
    # streams + resident state + live activations), clamped inside v7x's 64 MiB physical VMEM.
    def _nbytes(shape, itemsize):
        return math.prod(shape) * itemsize

    per_layer = sum(_nbytes(a.shape[1:], a.dtype.itemsize) for a in stacked)
    per_layer += _nbytes((bb, 3, 2, dim), 4)                       # FiLM block
    resident = (_nbytes((bb, t_len, dim), 4) * 2                   # x_in + out state
                + _nbytes((bb, s_len, dim), 4) * 2                 # cond + rotary(cond)
                + _nbytes((t_len, dim), 4) * 2)                    # cos/sin tables
    act = 12 * bb * t_len * max(dim, ff) * 4 + 4 * bb * s_len * dim * 4
    vmem_limit = int(min(56 * 2 ** 20,
                         max(32 * 2 ** 20, 2 * (per_layer + resident) + act + (2 << 20))))

    kernel = functools.partial(_stack_kernel, bb=bb, t_len=t_len, s_len=s_len,
                               dim=dim, heads=num_heads)

    # TODO(synk): if xprof shows exposed DMA on ff_w1/ff_w2 at production sizes on v5e/v6e,
    # raise their layer_spec pipelining with pipeline_mode=pl.Buffered(3).
    out = pl.pallas_call(
        kernel,
        out_shape=jax.ShapeDtypeStruct((bsz, t_len, dim), jnp.float32),
        grid=(bsz // bb, n_layers),
        in_specs=([batch_spec((t_len, dim)),        # x (initial state)
                   batch_spec((s_len, dim)),        # cond (values)
                   batch_spec((s_len, dim)),        # rotary(cond) (keys)
                   const_spec((t_len, dim)),        # rotary cos (query side)
                   const_spec((t_len, dim))]        # rotary sin
                  + [layer_spec(a) for a in stacked]
                  + [film_spec]),
        out_specs=pl.BlockSpec((bb, t_len, dim), lambda b, l: (b, 0, 0)),
        compiler_params=pltpu.CompilerParams(
            dimension_semantics=("parallel", "arbitrary"),   # layers are sequential
            vmem_limit_bytes=vmem_limit),
    )(x, cond, cond_rot, cos_t, sin_t, *stacked, ss)

    return out


# ----------------------------------------------------------------------------
# Deterministic synthetic parameters (stacked per-layer layout, no checkpoint)
# ----------------------------------------------------------------------------
def init_params(key, latent_dim, ff_size, num_layers):
    d, f, nl = latent_dim, ff_size, num_layers
    keys = iter(jax.random.split(key, 64))

    def w(shape, s=0.05):
        return (jax.random.normal(next(keys), shape, jnp.float32) * s).astype(jnp.bfloat16)

    def b(shape, s=0.02):
        return jax.random.normal(next(keys), shape, jnp.float32) * s

    return {
        # LayerNorm affine params (norm1, norm2, norm3) stacked per layer
        "ln_g": jnp.ones((nl, 3, d), jnp.float32),
        "ln_b": jnp.zeros((nl, 3, d), jnp.float32),
        # self-attention: Q, K (rotary input), V and output projections
        "sa_wq": w((nl, d, d)), "sa_bq": b((nl, 1, d)),
        "sa_wk": w((nl, d, d)), "sa_bk": b((nl, 1, d)),
        "sa_wv": w((nl, d, d)), "sa_bv": b((nl, 1, d)),
        "sa_wo": w((nl, d, d)), "sa_bo": b((nl, 1, d)),
        # cross-attention
        "ca_wq": w((nl, d, d)), "ca_bq": b((nl, 1, d)),
        "ca_wk": w((nl, d, d)), "ca_bk": b((nl, 1, d)),
        "ca_wv": w((nl, d, d)), "ca_bv": b((nl, 1, d)),
        "ca_wo": w((nl, d, d)), "ca_bo": b((nl, 1, d)),
        # feed-forward
        "ff_w1": w((nl, d, f)), "ff_b1": b((nl, 1, f)),
        "ff_w2": w((nl, f, d)), "ff_b2": b((nl, 1, d)),
        # DenseFiLM (Mish -> Linear(D, 2D)) x 3 films x num_layers batched into one matmul;
        # flat column index = ((l*3 + film)*2 + {scale,shift})*D + d
        "film_w": jax.random.normal(next(keys), (d, nl * 6 * d), jnp.float32) * 0.05,
        "film_b": jax.random.normal(next(keys), (nl * 6 * d,), jnp.float32) * 0.02,
    }


# ----------------------------------------------------------------------------
if __name__ == "__main__":
    B, T, S = 2, 8, 8          # batch, motion sequence length, cond-token sequence length
    D, F = 32, 64              # latent dim, feed-forward dim
    L, H = 4, 4                # decoder layers, attention heads
    # NOTE: at production, keep D a multiple of 128 and T a multiple of 8 — at this toy
    # config (D=32, head_dim=8) most of every 128-lane vreg / MXU column is padding.

    root = jax.random.PRNGKey(0)
    kp, kx, kc, kt = jax.random.split(root, 4)
    params = init_params(kp, D, F, L)
    x = jax.random.normal(kx, (B, T, D), jnp.float32)
    cond = jax.random.normal(kc, (B, S, D), jnp.float32)
    t = jax.random.normal(kt, (B, D), jnp.float32)

    # static config (num_heads) is bound via partial, never through the traced pytree
    fwd = jax.jit(functools.partial(decoder_layer_stack_forward, num_heads=H))
    out = jax.block_until_ready(fwd(params, x, cond, t))

    assert out.shape == (B, T, D), out.shape
    assert bool(jnp.all(jnp.isfinite(out)))
    print("KERNEL_OK")
</pallas_src>

<mosaic_0001>
module attributes {stable_mosaic.version = 11 : i64} {
  func.func @_stack_kernel(%arg0: i32, %arg1: i32, %arg2: memref<1x8x32xf32, #tpu.memory_space<vmem>>, %arg3: memref<1x8x32xf32, #tpu.memory_space<vmem>>, %arg4: memref<1x8x32xf32, #tpu.memory_space<vmem>>, %arg5: memref<8x32xf32, #tpu.memory_space<vmem>>, %arg6: memref<8x32xf32, #tpu.memory_space<vmem>>, %arg7: memref<1x3x32xf32, #tpu.memory_space<vmem>>, %arg8: memref<1x3x32xf32, #tpu.memory_space<vmem>>, %arg9: memref<1x32x32xbf16, #tpu.memory_space<vmem>>, %arg10: memref<1x1x32xf32, #tpu.memory_space<vmem>>, %arg11: memref<1x32x32xbf16, #tpu.memory_space<vmem>>, %arg12: memref<1x1x32xf32, #tpu.memory_space<vmem>>, %arg13: memref<1x32x32xbf16, #tpu.memory_space<vmem>>, %arg14: memref<1x1x32xf32, #tpu.memory_space<vmem>>, %arg15: memref<1x32x32xbf16, #tpu.memory_space<vmem>>, %arg16: memref<1x1x32xf32, #tpu.memory_space<vmem>>, %arg17: memref<1x32x32xbf16, #tpu.memory_space<vmem>>, %arg18: memref<1x1x32xf32, #tpu.memory_space<vmem>>, %arg19: memref<1x32x32xbf16, #tpu.memory_space<vmem>>, %arg20: memref<1x1x32xf32, #tpu.memory_space<vmem>>, %arg21: memref<1x32x32xbf16, #tpu.memory_space<vmem>>, %arg22: memref<1x1x32xf32, #tpu.memory_space<vmem>>, %arg23: memref<1x32x32xbf16, #tpu.memory_space<vmem>>, %arg24: memref<1x1x32xf32, #tpu.memory_space<vmem>>, %arg25: memref<1x32x64xbf16, #tpu.memory_space<vmem>>, %arg26: memref<1x1x64xf32, #tpu.memory_space<vmem>>, %arg27: memref<1x64x32xbf16, #tpu.memory_space<vmem>>, %arg28: memref<1x1x32xf32, #tpu.memory_space<vmem>>, %arg29: memref<1x1x3x2x32xf32, #tpu.memory_space<vmem>>, %arg30: memref<1x8x32xf32, #tpu.memory_space<vmem>>) attributes {dimension_semantics = [#tpu.dimension_semantics<parallel>, #tpu.dimension_semantics<arbitrary>], iteration_bounds = array<i64: 2, 4>, scalar_prefetch = 0 : i64, scratch_operands = 0 : i64, tpu.core_type = #tpu.core_type<tc>, window_params = [{transform_indices = @transform_0, window_bounds = array<i64: 1, 8, 32>}, {transform_indices = @transform_1, window_bounds = array<i64: 1, 8, 32>}, {transform_indices = @transform_2, window_bounds = array<i64: 1, 8, 32>}, {pipeline_mode = #tpu.pipeline_mode<synchronous>, transform_indices = @transform_3, window_bounds = array<i64: 8, 32>}, {pipeline_mode = #tpu.pipeline_mode<synchronous>, transform_indices = @transform_4, window_bounds = array<i64: 8, 32>}, {transform_indices = @transform_5, window_bounds = array<i64: 1, 3, 32>}, {transform_indices = @transform_6, window_bounds = array<i64: 1, 3, 32>}, {transform_indices = @transform_7, window_bounds = array<i64: 1, 32, 32>}, {transform_indices = @transform_8, window_bounds = array<i64: 1, 1, 32>}, {transform_indices = @transform_9, window_bounds = array<i64: 1, 32, 32>}, {transform_indices = @transform_10, window_bounds = array<i64: 1, 1, 32>}, {transform_indices = @transform_11, window_bounds = array<i64: 1, 32, 32>}, {transform_indices = @transform_12, window_bounds = array<i64: 1, 1, 32>}, {transform_indices = @transform_13, window_bounds = array<i64: 1, 32, 32>}, {transform_indices = @transform_14, window_bounds = array<i64: 1, 1, 32>}, {transform_indices = @transform_15, window_bounds = array<i64: 1, 32, 32>}, {transform_indices = @transform_16, window_bounds = array<i64: 1, 1, 32>}, {transform_indices = @transform_17, window_bounds = array<i64: 1, 32, 32>}, {transform_indices = @transform_18, window_bounds = array<i64: 1, 1, 32>}, {transform_indices = @transform_19, window_bounds = array<i64: 1, 32, 32>}, {transform_indices = @transform_20, window_bounds = array<i64: 1, 1, 32>}, {transform_indices = @transform_21, window_bounds = array<i64: 1, 32, 32>}, {transform_indices = @transform_22, window_bounds = array<i64: 1, 1, 32>}, {transform_indices = @transform_23, window_bounds = array<i64: 1, 32, 64>}, {transform_indices = @transform_24, window_bounds = array<i64: 1, 1, 64>}, {transform_indices = @transform_25, window_bounds = array<i64: 1, 64, 32>}, {transform_indices = @transform_26, window_bounds = array<i64: 1, 1, 32>}, {transform_indices = @transform_27, window_bounds = array<i64: 1, 1, 3, 2, 32>}, {transform_indices = @transform_28, window_bounds = array<i64: 1, 8, 32>}]} {
    %c0_i32 = arith.constant 0 : i32
    %0 = arith.cmpi eq, %arg1, %c0_i32 : i32
    %1 = arith.extui %0 : i1 to i32
    %c0_i32_0 = arith.constant 0 : i32
    %2 = arith.cmpi ne, %1, %c0_i32_0 : i32
    scf.if %2 {
      %c0_187 = arith.constant 0 : index
      %c0_188 = arith.constant 0 : index
      %c0_189 = arith.constant 0 : index
      %402 = vector.load %arg2[%c0_187, %c0_188, %c0_189] : memref<1x8x32xf32, #tpu.memory_space<vmem>>, vector<1x8x32xf32>
      %c0_190 = arith.constant 0 : index
      %c0_191 = arith.constant 0 : index
      %c0_192 = arith.constant 0 : index
      %403 = vector.load %arg30[%c0_190, %c0_191, %c0_192] : memref<1x8x32xf32, #tpu.memory_space<vmem>>, vector<1x8x32xf32>
      tpu.vector_store %arg30[%c0_190, %c0_191, %c0_192], %402 {strides = array<i32>} : memref<1x8x32xf32, #tpu.memory_space<vmem>>, vector<1x8x32xf32>,
    } else {
    }
    %c0 = arith.constant 0 : index
    %c0_1 = arith.constant 0 : index
    %c0_2 = arith.constant 0 : index
    %3 = vector.load %arg30[%c0, %c0_1, %c0_2] : memref<1x8x32xf32, #tpu.memory_space<vmem>>, vector<1x8x32xf32>
    %4 = vector.shape_cast %3 : vector<1x8x32xf32> to vector<8x32xf32>
    %c0_3 = arith.constant 0 : index
    %c0_4 = arith.constant 0 : index
    %c0_5 = arith.constant 0 : index
    %5 = vector.load %arg3[%c0_3, %c0_4, %c0_5] : memref<1x8x32xf32, #tpu.memory_space<vmem>>, vector<1x8x32xf32>
    %6 = vector.shape_cast %5 : vector<1x8x32xf32> to vector<8x32xf32>
    %c0_6 = arith.constant 0 : index
    %c0_7 = arith.constant 0 : index
    %c0_8 = arith.constant 0 : index
    %7 = vector.load %arg4[%c0_6, %c0_7, %c0_8] : memref<1x8x32xf32, #tpu.memory_space<vmem>>, vector<1x8x32xf32>
    %8 = vector.shape_cast %7 : vector<1x8x32xf32> to vector<8x32xf32>
    %c0_9 = arith.constant 0 : index
    %c0_10 = arith.constant 0 : index
    %9 = vector.load %arg5[%c0_9, %c0_10] : memref<8x32xf32, #tpu.memory_space<vmem>>, vector<8x32xf32>
    %c0_11 = arith.constant 0 : index
    %c0_12 = arith.constant 0 : index
    %10 = vector.load %arg6[%c0_11, %c0_12] : memref<8x32xf32, #tpu.memory_space<vmem>>, vector<8x32xf32>
    %11 = tpu.iota {dimensions = array<i32: 1>} : vector<8x32xi32>
    %c1_i32 = arith.constant 1 : i32
    %12 = vector.broadcast %c1_i32 : i32 to vector<8x32xi32>
    %13 = arith.andi %11, %12 : vector<8x32xi32>
    %c0_i32_13 = arith.constant 0 : i32
    %14 = vector.broadcast %c0_i32_13 : i32 to vector<8x32xi32>
    %15 = arith.cmpi eq, %13, %14 : vector<8x32xi32>
    %c0_14 = arith.constant 0 : index
    %c0_15 = arith.constant 0 : index
    %c0_16 = arith.constant 0 : index
    %16 = vector.load %arg7[%c0_14, %c0_15, %c0_16] : memref<1x3x32xf32, #tpu.memory_space<vmem>>, vector<1x3x32xf32>
    %17 = vector.shape_cast %16 : vector<1x3x32xf32> to vector<3x32xf32>
    %c0_17 = arith.constant 0 : index
    %c0_18 = arith.constant 0 : index
    %c0_19 = arith.constant 0 : index
    %18 = vector.load %arg8[%c0_17, %c0_18, %c0_19] : memref<1x3x32xf32, #tpu.memory_space<vmem>>, vector<1x3x32xf32>
    %19 = vector.shape_cast %18 : vector<1x3x32xf32> to vector<3x32xf32>
    %cst = arith.constant dense<0.000000e+00> : vector<8xf32>
    %20 = vector.multi_reduction <add>, %4, %cst [1] : vector<8x32xf32> to vector<8xf32>
    %21 = vector.shape_cast %20 : vector<8xf32> to vector<8x1xf32>
    %cst_20 = arith.constant 3.200000e+01 : f32
    %22 = vector.broadcast %cst_20 : f32 to vector<8x1xf32>
    %23 = arith.divf %21, %22 : vector<8x1xf32>
    %24 = vector.broadcast %23 : vector<8x1xf32> to vector<8x32xf32>
    %25 = arith.subf %4, %24 : vector<8x32xf32>
    %26 = arith.mulf %25, %25 : vector<8x32xf32>
    %cst_21 = arith.constant dense<0.000000e+00> : vector<8xf32>
    %27 = vector.multi_reduction <add>, %26, %cst_21 [1] : vector<8x32xf32> to vector<8xf32>
    %28 = vector.shape_cast %27 : vector<8xf32> to vector<8x1xf32>
    %cst_22 = arith.constant 3.200000e+01 : f32
    %29 = vector.broadcast %cst_22 : f32 to vector<8x1xf32>
    %30 = arith.divf %28, %29 : vector<8x1xf32>
    %cst_23 = arith.constant 9.99999974E-6 : f32
    %31 = vector.broadcast %cst_23 : f32 to vector<8x1xf32>
    %32 = arith.addf %30, %31 : vector<8x1xf32>
    %33 = math.rsqrt %32 : vector<8x1xf32>
    %34 = vector.broadcast %33 : vector<8x1xf32> to vector<8x32xf32>
    %35 = arith.mulf %25, %34 : vector<8x32xf32>
    %36 = vector.extract_strided_slice %17 {offsets = [0, 0], sizes = [1, 32], strides = [1, 1]} : vector<3x32xf32> to vector<1x32xf32>
    %37 = vector.broadcast %36 : vector<1x32xf32> to vector<8x32xf32>
    %38 = arith.mulf %35, %37 : vector<8x32xf32>
    %39 = vector.extract_strided_slice %19 {offsets = [0, 0], sizes = [1, 32], strides = [1, 1]} : vector<3x32xf32> to vector<1x32xf32>
    %40 = vector.broadcast %39 : vector<1x32xf32> to vector<8x32xf32>
    %41 = arith.addf %38, %40 : vector<8x32xf32>
    %c31_i32 = arith.constant 31 : i32
    %42 = tpu.dynamic_rotate %41 by %c31_i32 dim 1 : vector<8x32xf32>, i32 -> vector<8x32xf32>
    %c1_i32_24 = arith.constant 1 : i32
    %43 = tpu.dynamic_rotate %41 by %c1_i32_24 dim 1 : vector<8x32xf32>, i32 -> vector<8x32xf32>
    %44 = arith.mulf %41, %9 : vector<8x32xf32>
    %cst_25 = arith.constant 0.000000e+00 : f32
    %45 = vector.broadcast %cst_25 : f32 to vector<8x32xf32>
    %46 = arith.subf %45, %42 : vector<8x32xf32>
    %47 = arith.select %15, %46, %43 : vector<8x32xi1>, vector<8x32xf32>
    %48 = arith.mulf %47, %10 : vector<8x32xf32>
    %49 = arith.addf %44, %48 : vector<8x32xf32>
    %c0_26 = arith.constant 0 : index
    %c0_27 = arith.constant 0 : index
    %c0_28 = arith.constant 0 : index
    %50 = vector.load %arg9[%c0_26, %c0_27, %c0_28] : memref<1x32x32xbf16, #tpu.memory_space<vmem>>, vector<1x32x32xbf16>
    %51 = vector.shape_cast %50 : vector<1x32x32xbf16> to vector<32x32xbf16>
    %52 = arith.truncf %49 : vector<8x32xf32> to vector<8x32xbf16>
    %cst_29 = arith.constant dense<0.000000e+00> : vector<8x32xf32>
    %53 = tpu.matmul %52, %51, %cst_29 {dimension_numbers = #tpu.dot_dimension_numbers<[1], [0], [0], [1], [0, 0, 1, 1], [], []>} : vector<8x32xbf16>, vector<32x32xbf16>, vector<8x32xf32> -> vector<8x32xf32>
    %c0_30 = arith.constant 0 : index
    %c0_31 = arith.constant 0 : index
    %c0_32 = arith.constant 0 : index
    %54 = vector.load %arg10[%c0_30, %c0_31, %c0_32] : memref<1x1x32xf32, #tpu.memory_space<vmem>>, vector<1x1x32xf32>
    %55 = vector.shape_cast %54 : vector<1x1x32xf32> to vector<1x32xf32>
    %56 = vector.broadcast %55 : vector<1x32xf32> to vector<8x32xf32>
    %57 = arith.addf %53, %56 : vector<8x32xf32>
    %c0_33 = arith.constant 0 : index
    %c0_34 = arith.constant 0 : index
    %c0_35 = arith.constant 0 : index
    %58 = vector.load %arg11[%c0_33, %c0_34, %c0_35] : memref<1x32x32xbf16, #tpu.memory_space<vmem>>, vector<1x32x32xbf16>
    %59 = vector.shape_cast %58 : vector<1x32x32xbf16> to vector<32x32xbf16>
    %60 = arith.truncf %49 : vector<8x32xf32> to vector<8x32xbf16>
    %cst_36 = arith.constant dense<0.000000e+00> : vector<8x32xf32>
    %61 = tpu.matmul %60, %59, %cst_36 {dimension_numbers = #tpu.dot_dimension_numbers<[1], [0], [0], [1], [0, 0, 1, 1], [], []>} : vector<8x32xbf16>, vector<32x32xbf16>, vector<8x32xf32> -> vector<8x32xf32>
    %c0_37 = arith.constant 0 : index
    %c0_38 = arith.constant 0 : index
    %c0_39 = arith.constant 0 : index
    %62 = vector.load %arg12[%c0_37, %c0_38, %c0_39] : memref<1x1x32xf32, #tpu.memory_space<vmem>>, vector<1x1x32xf32>
    %63 = vector.shape_cast %62 : vector<1x1x32xf32> to vector<1x32xf32>
    %64 = vector.broadcast %63 : vector<1x32xf32> to vector<8x32xf32>
    %65 = arith.addf %61, %64 : vector<8x32xf32>
    %c0_40 = arith.constant 0 : index
    %c0_41 = arith.constant 0 : index
    %c0_42 = arith.constant 0 : index
    %66 = vector.load %arg13[%c0_40, %c0_41, %c0_42] : memref<1x32x32xbf16, #tpu.memory_space<vmem>>, vector<1x32x32xbf16>
    %67 = vector.shape_cast %66 : vector<1x32x32xbf16> to vector<32x32xbf16>
    %68 = arith.truncf %41 : vector<8x32xf32> to vector<8x32xbf16>
    %cst_43 = arith.constant dense<0.000000e+00> : vector<8x32xf32>
    %69 = tpu.matmul %68, %67, %cst_43 {dimension_numbers = #tpu.dot_dimension_numbers<[1], [0], [0], [1], [0, 0, 1, 1], [], []>} : vector<8x32xbf16>, vector<32x32xbf16>, vector<8x32xf32> -> vector<8x32xf32>
    %c0_44 = arith.constant 0 : index
    %c0_45 = arith.constant 0 : index
    %c0_46 = arith.constant 0 : index
    %70 = vector.load %arg14[%c0_44, %c0_45, %c0_46] : memref<1x1x32xf32, #tpu.memory_space<vmem>>, vector<1x1x32xf32>
    %71 = vector.shape_cast %70 : vector<1x1x32xf32> to vector<1x32xf32>
    %72 = vector.broadcast %71 : vector<1x32xf32> to vector<8x32xf32>
    %73 = arith.addf %69, %72 : vector<8x32xf32>
    %74 = vector.shape_cast %57 : vector<8x32xf32> to vector<1x8x32xf32>
    %75 = arith.truncf %74 : vector<1x8x32xf32> to vector<1x8x32xbf16>
    %76 = vector.shape_cast %65 : vector<8x32xf32> to vector<1x8x32xf32>
    %77 = arith.truncf %76 : vector<1x8x32xf32> to vector<1x8x32xbf16>
    %78 = vector.shape_cast %73 : vector<8x32xf32> to vector<1x8x32xf32>
    %79 = arith.truncf %78 : vector<1x8x32xf32> to vector<1x8x32xbf16>
    %80 = vector.extract_strided_slice %75 {offsets = [0, 0, 0], sizes = [1, 8, 8], strides = [1, 1, 1]} : vector<1x8x32xbf16> to vector<1x8x8xbf16>
    %81 = vector.extract_strided_slice %77 {offsets = [0, 0, 0], sizes = [1, 8, 8], strides = [1, 1, 1]} : vector<1x8x32xbf16> to vector<1x8x8xbf16>
    "tpu.trace_start"() <{level = 10 : i32, message = "bqd,bkd->bqk"}> : () -> ()
    %cst_47 = arith.constant dense<0.000000e+00> : vector<1x8x8xf32>
    %82 = tpu.matmul %80, %81, %cst_47 {dimension_numbers = #tpu.dot_dimension_numbers<[2], [2], [1], [1], [0, 0, 0, 1, 1, 1], [0], [0]>} : vector<1x8x8xbf16>, vector<1x8x8xbf16>, vector<1x8x8xf32> -> vector<1x8x8xf32>
    "tpu.trace_stop"() : () -> ()
    %cst_48 = arith.constant 0.353553385 : f32
    %83 = vector.broadcast %cst_48 : f32 to vector<1x8x8xf32>
    %84 = arith.mulf %82, %83 : vector<1x8x8xf32>
    %cst_49 = arith.constant dense<0xFF800000> : vector<1x8xf32>
    %85 = vector.multi_reduction <maximumf>, %84, %cst_49 [2] : vector<1x8x8xf32> to vector<1x8xf32>
    %86 = vector.shape_cast %85 : vector<1x8xf32> to vector<1x8x1xf32>
    %87 = vector.broadcast %86 : vector<1x8x1xf32> to vector<1x8x8xf32>
    %88 = arith.subf %84, %87 : vector<1x8x8xf32>
    %89 = math.exp %88 : vector<1x8x8xf32>
    %cst_50 = arith.constant dense<0.000000e+00> : vector<1x8xf32>
    %90 = vector.multi_reduction <add>, %89, %cst_50 [2] : vector<1x8x8xf32> to vector<1x8xf32>
    %91 = vector.shape_cast %90 : vector<1x8xf32> to vector<1x8x1xf32>
    %92 = tpu.reciprocal %91 {approx = true} : vector<1x8x1xf32> -> vector<1x8x1xf32>
    %93 = vector.broadcast %92 : vector<1x8x1xf32> to vector<1x8x8xf32>
    %94 = arith.mulf %89, %93 : vector<1x8x8xf32>
    %95 = arith.truncf %94 : vector<1x8x8xf32> to vector<1x8x8xbf16>
    %96 = vector.extract_strided_slice %79 {offsets = [0, 0, 0], sizes = [1, 8, 8], strides = [1, 1, 1]} : vector<1x8x32xbf16> to vector<1x8x8xbf16>
    "tpu.trace_start"() <{level = 10 : i32, message = "bqk,bkd->bqd"}> : () -> ()
    %cst_51 = arith.constant dense<0.000000e+00> : vector<1x8x8xf32>
    %97 = tpu.matmul %95, %96, %cst_51 {dimension_numbers = #tpu.dot_dimension_numbers<[2], [1], [1], [2], [0, 0, 0, 1, 1, 2], [0], [0]>} : vector<1x8x8xbf16>, vector<1x8x8xbf16>, vector<1x8x8xf32> -> vector<1x8x8xf32>
    "tpu.trace_stop"() : () -> ()
    %98 = vector.extract_strided_slice %75 {offsets = [0, 0, 8], sizes = [1, 8, 8], strides = [1, 1, 1]} : vector<1x8x32xbf16> to vector<1x8x8xbf16>
    %99 = vector.extract_strided_slice %77 {offsets = [0, 0, 8], sizes = [1, 8, 8], strides = [1, 1, 1]} : vector<1x8x32xbf16> to vector<1x8x8xbf16>
    "tpu.trace_start"() <{level = 10 : i32, message = "bqd,bkd->bqk"}> : () -> ()
    %cst_52 = arith.constant dense<0.000000e+00> : vector<1x8x8xf32>
    %100 = tpu.matmul %98, %99, %cst_52 {dimension_numbers = #tpu.dot_dimension_numbers<[2], [2], [1], [1], [0, 0, 0, 1, 1, 1], [0], [0]>} : vector<1x8x8xbf16>, vector<1x8x8xbf16>, vector<1x8x8xf32> -> vector<1x8x8xf32>
    "tpu.trace_stop"() : () -> ()
    %cst_53 = arith.constant 0.353553385 : f32
    %101 = vector.broadcast %cst_53 : f32 to vector<1x8x8xf32>
    %102 = arith.mulf %100, %101 : vector<1x8x8xf32>
    %cst_54 = arith.constant dense<0xFF800000> : vector<1x8xf32>
    %103 = vector.multi_reduction <maximumf>, %102, %cst_54 [2] : vector<1x8x8xf32> to vector<1x8xf32>
    %104 = vector.shape_cast %103 : vector<1x8xf32> to vector<1x8x1xf32>
    %105 = vector.broadcast %104 : vector<1x8x1xf32> to vector<1x8x8xf32>
    %106 = arith.subf %102, %105 : vector<1x8x8xf32>
    %107 = math.exp %106 : vector<1x8x8xf32>
    %cst_55 = arith.constant dense<0.000000e+00> : vector<1x8xf32>
    %108 = vector.multi_reduction <add>, %107, %cst_55 [2] : vector<1x8x8xf32> to vector<1x8xf32>
    %109 = vector.shape_cast %108 : vector<1x8xf32> to vector<1x8x1xf32>
    %110 = tpu.reciprocal %109 {approx = true} : vector<1x8x1xf32> -> vector<1x8x1xf32>
    %111 = vector.broadcast %110 : vector<1x8x1xf32> to vector<1x8x8xf32>
    %112 = arith.mulf %107, %111 : vector<1x8x8xf32>
    %113 = arith.truncf %112 : vector<1x8x8xf32> to vector<1x8x8xbf16>
    %114 = vector.extract_strided_slice %79 {offsets = [0, 0, 8], sizes = [1, 8, 8], strides = [1, 1, 1]} : vector<1x8x32xbf16> to vector<1x8x8xbf16>
    "tpu.trace_start"() <{level = 10 : i32, message = "bqk,bkd->bqd"}> : () -> ()
    %cst_56 = arith.constant dense<0.000000e+00> : vector<1x8x8xf32>
    %115 = tpu.matmul %113, %114, %cst_56 {dimension_numbers = #tpu.dot_dimension_numbers<[2], [1], [1], [2], [0, 0, 0, 1, 1, 2], [0], [0]>} : vector<1x8x8xbf16>, vector<1x8x8xbf16>, vector<1x8x8xf32> -> vector<1x8x8xf32>
    "tpu.trace_stop"() : () -> ()
    %116 = vector.extract_strided_slice %75 {offsets = [0, 0, 16], sizes = [1, 8, 8], strides = [1, 1, 1]} : vector<1x8x32xbf16> to vector<1x8x8xbf16>
    %117 = vector.extract_strided_slice %77 {offsets = [0, 0, 16], sizes = [1, 8, 8], strides = [1, 1, 1]} : vector<1x8x32xbf16> to vector<1x8x8xbf16>
    "tpu.trace_start"() <{level = 10 : i32, message = "bqd,bkd->bqk"}> : () -> ()
    %cst_57 = arith.constant dense<0.000000e+00> : vector<1x8x8xf32>
    %118 = tpu.matmul %116, %117, %cst_57 {dimension_numbers = #tpu.dot_dimension_numbers<[2], [2], [1], [1], [0, 0, 0, 1, 1, 1], [0], [0]>} : vector<1x8x8xbf16>, vector<1x8x8xbf16>, vector<1x8x8xf32> -> vector<1x8x8xf32>
    "tpu.trace_stop"() : () -> ()
    %cst_58 = arith.constant 0.353553385 : f32
    %119 = vector.broadcast %cst_58 : f32 to vector<1x8x8xf32>
    %120 = arith.mulf %118, %119 : vector<1x8x8xf32>
    %cst_59 = arith.constant dense<0xFF800000> : vector<1x8xf32>
    %121 = vector.multi_reduction <maximumf>, %120, %cst_59 [2] : vector<1x8x8xf32> to vector<1x8xf32>
    %122 = vector.shape_cast %121 : vector<1x8xf32> to vector<1x8x1xf32>
    %123 = vector.broadcast %122 : vector<1x8x1xf32> to vector<1x8x8xf32>
    %124 = arith.subf %120, %123 : vector<1x8x8xf32>
    %125 = math.exp %124 : vector<1x8x8xf32>
    %cst_60 = arith.constant dense<0.000000e+00> : vector<1x8xf32>
    %126 = vector.multi_reduction <add>, %125, %cst_60 [2] : vector<1x8x8xf32> to vector<1x8xf32>
    %127 = vector.shape_cast %126 : vector<1x8xf32> to vector<1x8x1xf32>
    %128 = tpu.reciprocal %127 {approx = true} : vector<1x8x1xf32> -> vector<1x8x1xf32>
    %129 = vector.broadcast %128 : vector<1x8x1xf32> to vector<1x8x8xf32>
    %130 = arith.mulf %125, %129 : vector<1x8x8xf32>
    %131 = arith.truncf %130 : vector<1x8x8xf32> to vector<1x8x8xbf16>
    %132 = vector.extract_strided_slice %79 {offsets = [0, 0, 16], sizes = [1, 8, 8], strides = [1, 1, 1]} : vector<1x8x32xbf16> to vector<1x8x8xbf16>
    "tpu.trace_start"() <{level = 10 : i32, message = "bqk,bkd->bqd"}> : () -> ()
    %cst_61 = arith.constant dense<0.000000e+00> : vector<1x8x8xf32>
    %133 = tpu.matmul %131, %132, %cst_61 {dimension_numbers = #tpu.dot_dimension_numbers<[2], [1], [1], [2], [0, 0, 0, 1, 1, 2], [0], [0]>} : vector<1x8x8xbf16>, vector<1x8x8xbf16>, vector<1x8x8xf32> -> vector<1x8x8xf32>
    "tpu.trace_stop"() : () -> ()
    %134 = vector.extract_strided_slice %75 {offsets = [0, 0, 24], sizes = [1, 8, 8], strides = [1, 1, 1]} : vector<1x8x32xbf16> to vector<1x8x8xbf16>
    %135 = vector.extract_strided_slice %77 {offsets = [0, 0, 24], sizes = [1, 8, 8], strides = [1, 1, 1]} : vector<1x8x32xbf16> to vector<1x8x8xbf16>
    "tpu.trace_start"() <{level = 10 : i32, message = "bqd,bkd->bqk"}> : () -> ()
    %cst_62 = arith.constant dense<0.000000e+00> : vector<1x8x8xf32>
    %136 = tpu.matmul %134, %135, %cst_62 {dimension_numbers = #tpu.dot_dimension_numbers<[2], [2], [1], [1], [0, 0, 0, 1, 1, 1], [0], [0]>} : vector<1x8x8xbf16>, vector<1x8x8xbf16>, vector<1x8x8xf32> -> vector<1x8x8xf32>
    "tpu.trace_stop"() : () -> ()
    %cst_63 = arith.constant 0.353553385 : f32
    %137 = vector.broadcast %cst_63 : f32 to vector<1x8x8xf32>
    %138 = arith.mulf %136, %137 : vector<1x8x8xf32>
    %cst_64 = arith.constant dense<0xFF800000> : vector<1x8xf32>
    %139 = vector.multi_reduction <maximumf>, %138, %cst_64 [2] : vector<1x8x8xf32> to vector<1x8xf32>
    %140 = vector.shape_cast %139 : vector<1x8xf32> to vector<1x8x1xf32>
    %141 = vector.broadcast %140 : vector<1x8x1xf32> to vector<1x8x8xf32>
    %142 = arith.subf %138, %141 : vector<1x8x8xf32>
    %143 = math.exp %142 : vector<1x8x8xf32>
    %cst_65 = arith.constant dense<0.000000e+00> : vector<1x8xf32>
    %144 = vector.multi_reduction <add>, %143, %cst_65 [2] : vector<1x8x8xf32> to vector<1x8xf32>
    %145 = vector.shape_cast %144 : vector<1x8xf32> to vector<1x8x1xf32>
    %146 = tpu.reciprocal %145 {approx = true} : vector<1x8x1xf32> -> vector<1x8x1xf32>
    %147 = vector.broadcast %146 : vector<1x8x1xf32> to vector<1x8x8xf32>
    %148 = arith.mulf %143, %147 : vector<1x8x8xf32>
    %149 = arith.truncf %148 : vector<1x8x8xf32> to vector<1x8x8xbf16>
    %150 = vector.extract_strided_slice %79 {offsets = [0, 0, 24], sizes = [1, 8, 8], strides = [1, 1, 1]} : vector<1x8x32xbf16> to vector<1x8x8xbf16>
    "tpu.trace_start"() <{level = 10 : i32, message = "bqk,bkd->bqd"}> : () -> ()
    %cst_66 = arith.constant dense<0.000000e+00> : vector<1x8x8xf32>
    %151 = tpu.matmul %149, %150, %cst_66 {dimension_numbers = #tpu.dot_dimension_numbers<[2], [1], [1], [2], [0, 0, 0, 1, 1, 2], [0], [0]>} : vector<1x8x8xbf16>, vector<1x8x8xbf16>, vector<1x8x8xf32> -> vector<1x8x8xf32>
    "tpu.trace_stop"() : () -> ()
    %152 = tpu.concatenate %97, %115, %133, %151 in 2 : vector<1x8x8xf32>, vector<1x8x8xf32>, vector<1x8x8xf32>, vector<1x8x8xf32> -> vector<1x8x32xf32>
    %153 = vector.shape_cast %152 : vector<1x8x32xf32> to vector<8x32xf32>
    %c0_67 = arith.constant 0 : index
    %c0_68 = arith.constant 0 : index
    %c0_69 = arith.constant 0 : index
    %154 = vector.load %arg15[%c0_67, %c0_68, %c0_69] : memref<1x32x32xbf16, #tpu.memory_space<vmem>>, vector<1x32x32xbf16>
    %155 = vector.shape_cast %154 : vector<1x32x32xbf16> to vector<32x32xbf16>
    %156 = arith.truncf %153 : vector<8x32xf32> to vector<8x32xbf16>
    %cst_70 = arith.constant dense<0.000000e+00> : vector<8x32xf32>
    %157 = tpu.matmul %156, %155, %cst_70 {dimension_numbers = #tpu.dot_dimension_numbers<[1], [0], [0], [1], [0, 0, 1, 1], [], []>} : vector<8x32xbf16>, vector<32x32xbf16>, vector<8x32xf32> -> vector<8x32xf32>
    %c0_71 = arith.constant 0 : index
    %c0_72 = arith.constant 0 : index
    %c0_73 = arith.constant 0 : index
    %158 = vector.load %arg16[%c0_71, %c0_72, %c0_73] : memref<1x1x32xf32, #tpu.memory_space<vmem>>, vector<1x1x32xf32>
    %159 = vector.shape_cast %158 : vector<1x1x32xf32> to vector<1x32xf32>
    %160 = vector.broadcast %159 : vector<1x32xf32> to vector<8x32xf32>
    %161 = arith.addf %157, %160 : vector<8x32xf32>
    %c0_74 = arith.constant 0 : index
    %c0_75 = arith.constant 0 : index
    %c0_76 = arith.constant 0 : index
    %c0_77 = arith.constant 0 : index
    %c0_78 = arith.constant 0 : index
    %162 = vector.load %arg29[%c0_74, %c0_75, %c0_76, %c0_77, %c0_78] : memref<1x1x3x2x32xf32, #tpu.memory_space<vmem>>, vector<1x1x1x1x32xf32>
    %163 = vector.shape_cast %162 : vector<1x1x1x1x32xf32> to vector<1x32xf32>
    %c0_79 = arith.constant 0 : index
    %c0_80 = arith.constant 0 : index
    %c0_81 = arith.constant 0 : index
    %c1 = arith.constant 1 : index
    %c0_82 = arith.constant 0 : index
    %164 = vector.load %arg29[%c0_79, %c0_80, %c0_81, %c1, %c0_82] : memref<1x1x3x2x32xf32, #tpu.memory_space<vmem>>, vector<1x1x1x1x32xf32>
    %165 = vector.shape_cast %164 : vector<1x1x1x1x32xf32> to vector<1x32xf32>
    %166 = vector.shape_cast %161 : vector<8x32xf32> to vector<1x8x32xf32>
    %cst_83 = arith.constant 1.000000e+00 : f32
    %167 = vector.broadcast %cst_83 : f32 to vector<1x32xf32>
    %168 = arith.addf %163, %167 : vector<1x32xf32>
    %169 = vector.shape_cast %168 : vector<1x32xf32> to vector<1x1x32xf32>
    %170 = vector.broadcast %169 : vector<1x1x32xf32> to vector<1x8x32xf32>
    %171 = arith.mulf %170, %166 : vector<1x8x32xf32>
    %172 = vector.shape_cast %165 : vector<1x32xf32> to vector<1x1x32xf32>
    %173 = vector.broadcast %172 : vector<1x1x32xf32> to vector<1x8x32xf32>
    %174 = arith.addf %171, %173 : vector<1x8x32xf32>
    %175 = vector.shape_cast %174 : vector<1x8x32xf32> to vector<8x32xf32>
    %176 = arith.addf %4, %175 : vector<8x32xf32>
    %cst_84 = arith.constant dense<0.000000e+00> : vector<8xf32>
    %177 = vector.multi_reduction <add>, %176, %cst_84 [1] : vector<8x32xf32> to vector<8xf32>
    %178 = vector.shape_cast %177 : vector<8xf32> to vector<8x1xf32>
    %cst_85 = arith.constant 3.200000e+01 : f32
    %179 = vector.broadcast %cst_85 : f32 to vector<8x1xf32>
    %180 = arith.divf %178, %179 : vector<8x1xf32>
    %181 = vector.broadcast %180 : vector<8x1xf32> to vector<8x32xf32>
    %182 = arith.subf %176, %181 : vector<8x32xf32>
    %183 = arith.mulf %182, %182 : vector<8x32xf32>
    %cst_86 = arith.constant dense<0.000000e+00> : vector<8xf32>
    %184 = vector.multi_reduction <add>, %183, %cst_86 [1] : vector<8x32xf32> to vector<8xf32>
    %185 = vector.shape_cast %184 : vector<8xf32> to vector<8x1xf32>
    %cst_87 = arith.constant 3.200000e+01 : f32
    %186 = vector.broadcast %cst_87 : f32 to vector<8x1xf32>
    %187 = arith.divf %185, %186 : vector<8x1xf32>
    %cst_88 = arith.constant 9.99999974E-6 : f32
    %188 = vector.broadcast %cst_88 : f32 to vector<8x1xf32>
    %189 = arith.addf %187, %188 : vector<8x1xf32>
    %190 = math.rsqrt %189 : vector<8x1xf32>
    %191 = vector.broadcast %190 : vector<8x1xf32> to vector<8x32xf32>
    %192 = arith.mulf %182, %191 : vector<8x32xf32>
    %193 = vector.extract_strided_slice %17 {offsets = [1, 0], sizes = [1, 32], strides = [1, 1]} : vector<3x32xf32> to vector<1x32xf32>
    %194 = vector.broadcast %193 : vector<1x32xf32> to vector<8x32xf32>
    %195 = arith.mulf %192, %194 : vector<8x32xf32>
    %196 = vector.extract_strided_slice %19 {offsets = [1, 0], sizes = [1, 32], strides = [1, 1]} : vector<3x32xf32> to vector<1x32xf32>
    %197 = vector.broadcast %196 : vector<1x32xf32> to vector<8x32xf32>
    %198 = arith.addf %195, %197 : vector<8x32xf32>
    %c31_i32_89 = arith.constant 31 : i32
    %199 = tpu.dynamic_rotate %198 by %c31_i32_89 dim 1 : vector<8x32xf32>, i32 -> vector<8x32xf32>
    %c1_i32_90 = arith.constant 1 : i32
    %200 = tpu.dynamic_rotate %198 by %c1_i32_90 dim 1 : vector<8x32xf32>, i32 -> vector<8x32xf32>
    %201 = arith.mulf %198, %9 : vector<8x32xf32>
    %cst_91 = arith.constant 0.000000e+00 : f32
    %202 = vector.broadcast %cst_91 : f32 to vector<8x32xf32>
    %203 = arith.subf %202, %199 : vector<8x32xf32>
    %204 = arith.select %15, %203, %200 : vector<8x32xi1>, vector<8x32xf32>
    %205 = arith.mulf %204, %10 : vector<8x32xf32>
    %206 = arith.addf %201, %205 : vector<8x32xf32>
    %c0_92 = arith.constant 0 : index
    %c0_93 = arith.constant 0 : index
    %c0_94 = arith.constant 0 : index
    %207 = vector.load %arg17[%c0_92, %c0_93, %c0_94] : memref<1x32x32xbf16, #tpu.memory_space<vmem>>, vector<1x32x32xbf16>
    %208 = vector.shape_cast %207 : vector<1x32x32xbf16> to vector<32x32xbf16>
    %209 = arith.truncf %206 : vector<8x32xf32> to vector<8x32xbf16>
    %cst_95 = arith.constant dense<0.000000e+00> : vector<8x32xf32>
    %210 = tpu.matmul %209, %208, %cst_95 {dimension_numbers = #tpu.dot_dimension_numbers<[1], [0], [0], [1], [0, 0, 1, 1], [], []>} : vector<8x32xbf16>, vector<32x32xbf16>, vector<8x32xf32> -> vector<8x32xf32>
    %c0_96 = arith.constant 0 : index
    %c0_97 = arith.constant 0 : index
    %c0_98 = arith.constant 0 : index
    %211 = vector.load %arg18[%c0_96, %c0_97, %c0_98] : memref<1x1x32xf32, #tpu.memory_space<vmem>>, vector<1x1x32xf32>
    %212 = vector.shape_cast %211 : vector<1x1x32xf32> to vector<1x32xf32>
    %213 = vector.broadcast %212 : vector<1x32xf32> to vector<8x32xf32>
    %214 = arith.addf %210, %213 : vector<8x32xf32>
    %c0_99 = arith.constant 0 : index
    %c0_100 = arith.constant 0 : index
    %c0_101 = arith.constant 0 : index
    %215 = vector.load %arg19[%c0_99, %c0_100, %c0_101] : memref<1x32x32xbf16, #tpu.memory_space<vmem>>, vector<1x32x32xbf16>
    %216 = vector.shape_cast %215 : vector<1x32x32xbf16> to vector<32x32xbf16>
    %217 = arith.truncf %8 : vector<8x32xf32> to vector<8x32xbf16>
    %cst_102 = arith.constant dense<0.000000e+00> : vector<8x32xf32>
    %218 = tpu.matmul %217, %216, %cst_102 {dimension_numbers = #tpu.dot_dimension_numbers<[1], [0], [0], [1], [0, 0, 1, 1], [], []>} : vector<8x32xbf16>, vector<32x32xbf16>, vector<8x32xf32> -> vector<8x32xf32>
    %c0_103 = arith.constant 0 : index
    %c0_104 = arith.constant 0 : index
    %c0_105 = arith.constant 0 : index
    %219 = vector.load %arg20[%c0_103, %c0_104, %c0_105] : memref<1x1x32xf32, #tpu.memory_space<vmem>>, vector<1x1x32xf32>
    %220 = vector.shape_cast %219 : vector<1x1x32xf32> to vector<1x32xf32>
    %221 = vector.broadcast %220 : vector<1x32xf32> to vector<8x32xf32>
    %222 = arith.addf %218, %221 : vector<8x32xf32>
    %c0_106 = arith.constant 0 : index
    %c0_107 = arith.constant 0 : index
    %c0_108 = arith.constant 0 : index
    %223 = vector.load %arg21[%c0_106, %c0_107, %c0_108] : memref<1x32x32xbf16, #tpu.memory_space<vmem>>, vector<1x32x32xbf16>
    %224 = vector.shape_cast %223 : vector<1x32x32xbf16> to vector<32x32xbf16>
    %225 = arith.truncf %6 : vector<8x32xf32> to vector<8x32xbf16>
    %cst_109 = arith.constant dense<0.000000e+00> : vector<8x32xf32>
    %226 = tpu.matmul %225, %224, %cst_109 {dimension_numbers = #tpu.dot_dimension_numbers<[1], [0], [0], [1], [0, 0, 1, 1], [], []>} : vector<8x32xbf16>, vector<32x32xbf16>, vector<8x32xf32> -> vector<8x32xf32>
    %c0_110 = arith.constant 0 : index
    %c0_111 = arith.constant 0 : index
    %c0_112 = arith.constant 0 : index
    %227 = vector.load %arg22[%c0_110, %c0_111, %c0_112] : memref<1x1x32xf32, #tpu.memory_space<vmem>>, vector<1x1x32xf32>
    %228 = vector.shape_cast %227 : vector<1x1x32xf32> to vector<1x32xf32>
    %229 = vector.broadcast %228 : vector<1x32xf32> to vector<8x32xf32>
    %230 = arith.addf %226, %229 : vector<8x32xf32>
    %231 = vector.shape_cast %214 : vector<8x32xf32> to vector<1x8x32xf32>
    %232 = arith.truncf %231 : vector<1x8x32xf32> to vector<1x8x32xbf16>
    %233 = vector.shape_cast %222 : vector<8x32xf32> to vector<1x8x32xf32>
    %234 = arith.truncf %233 : vector<1x8x32xf32> to vector<1x8x32xbf16>
    %235 = vector.shape_cast %230 : vector<8x32xf32> to vector<1x8x32xf32>
    %236 = arith.truncf %235 : vector<1x8x32xf32> to vector<1x8x32xbf16>
    %237 = vector.extract_strided_slice %232 {offsets = [0, 0, 0], sizes = [1, 8, 8], strides = [1, 1, 1]} : vector<1x8x32xbf16> to vector<1x8x8xbf16>
    %238 = vector.extract_strided_slice %234 {offsets = [0, 0, 0], sizes = [1, 8, 8], strides = [1, 1, 1]} : vector<1x8x32xbf16> to vector<1x8x8xbf16>
    "tpu.trace_start"() <{level = 10 : i32, message = "bqd,bkd->bqk"}> : () -> ()
    %cst_113 = arith.constant dense<0.000000e+00> : vector<1x8x8xf32>
    %239 = tpu.matmul %237, %238, %cst_113 {dimension_numbers = #tpu.dot_dimension_numbers<[2], [2], [1], [1], [0, 0, 0, 1, 1, 1], [0], [0]>} : vector<1x8x8xbf16>, vector<1x8x8xbf16>, vector<1x8x8xf32> -> vector<1x8x8xf32>
    "tpu.trace_stop"() : () -> ()
    %cst_114 = arith.constant 0.353553385 : f32
    %240 = vector.broadcast %cst_114 : f32 to vector<1x8x8xf32>
    %241 = arith.mulf %239, %240 : vector<1x8x8xf32>
    %cst_115 = arith.constant dense<0xFF800000> : vector<1x8xf32>
    %242 = vector.multi_reduction <maximumf>, %241, %cst_115 [2] : vector<1x8x8xf32> to vector<1x8xf32>
    %243 = vector.shape_cast %242 : vector<1x8xf32> to vector<1x8x1xf32>
    %244 = vector.broadcast %243 : vector<1x8x1xf32> to vector<1x8x8xf32>
    %245 = arith.subf %241, %244 : vector<1x8x8xf32>
    %246 = math.exp %245 : vector<1x8x8xf32>
    %cst_116 = arith.constant dense<0.000000e+00> : vector<1x8xf32>
    %247 = vector.multi_reduction <add>, %246, %cst_116 [2] : vector<1x8x8xf32> to vector<1x8xf32>
    %248 = vector.shape_cast %247 : vector<1x8xf32> to vector<1x8x1xf32>
    %249 = tpu.reciprocal %248 {approx = true} : vector<1x8x1xf32> -> vector<1x8x1xf32>
    %250 = vector.broadcast %249 : vector<1x8x1xf32> to vector<1x8x8xf32>
    %251 = arith.mulf %246, %250 : vector<1x8x8xf32>
    %252 = arith.truncf %251 : vector<1x8x8xf32> to vector<1x8x8xbf16>
    %253 = vector.extract_strided_slice %236 {offsets = [0, 0, 0], sizes = [1, 8, 8], strides = [1, 1, 1]} : vector<1x8x32xbf16> to vector<1x8x8xbf16>
    "tpu.trace_start"() <{level = 10 : i32, message = "bqk,bkd->bqd"}> : () -> ()
    %cst_117 = arith.constant dense<0.000000e+00> : vector<1x8x8xf32>
    %254 = tpu.matmul %252, %253, %cst_117 {dimension_numbers = #tpu.dot_dimension_numbers<[2], [1], [1], [2], [0, 0, 0, 1, 1, 2], [0], [0]>} : vector<1x8x8xbf16>, vector<1x8x8xbf16>, vector<1x8x8xf32> -> vector<1x8x8xf32>
    "tpu.trace_stop"() : () -> ()
    %255 = vector.extract_strided_slice %232 {offsets = [0, 0, 8], sizes = [1, 8, 8], strides = [1, 1, 1]} : vector<1x8x32xbf16> to vector<1x8x8xbf16>
    %256 = vector.extract_strided_slice %234 {offsets = [0, 0, 8], sizes = [1, 8, 8], strides = [1, 1, 1]} : vector<1x8x32xbf16> to vector<1x8x8xbf16>
    "tpu.trace_start"() <{level = 10 : i32, message = "bqd,bkd->bqk"}> : () -> ()
    %cst_118 = arith.constant dense<0.000000e+00> : vector<1x8x8xf32>
    %257 = tpu.matmul %255, %256, %cst_118 {dimension_numbers = #tpu.dot_dimension_numbers<[2], [2], [1], [1], [0, 0, 0, 1, 1, 1], [0], [0]>} : vector<1x8x8xbf16>, vector<1x8x8xbf16>, vector<1x8x8xf32> -> vector<1x8x8xf32>
    "tpu.trace_stop"() : () -> ()
    %cst_119 = arith.constant 0.353553385 : f32
    %258 = vector.broadcast %cst_119 : f32 to vector<1x8x8xf32>
    %259 = arith.mulf %257, %258 : vector<1x8x8xf32>
    %cst_120 = arith.constant dense<0xFF800000> : vector<1x8xf32>
    %260 = vector.multi_reduction <maximumf>, %259, %cst_120 [2] : vector<1x8x8xf32> to vector<1x8xf32>
    %261 = vector.shape_cast %260 : vector<1x8xf32> to vector<1x8x1xf32>
    %262 = vector.broadcast %261 : vector<1x8x1xf32> to vector<1x8x8xf32>
    %263 = arith.subf %259, %262 : vector<1x8x8xf32>
    %264 = math.exp %263 : vector<1x8x8xf32>
    %cst_121 = arith.constant dense<0.000000e+00> : vector<1x8xf32>
    %265 = vector.multi_reduction <add>, %264, %cst_121 [2] : vector<1x8x8xf32> to vector<1x8xf32>
    %266 = vector.shape_cast %265 : vector<1x8xf32> to vector<1x8x1xf32>
    %267 = tpu.reciprocal %266 {approx = true} : vector<1x8x1xf32> -> vector<1x8x1xf32>
    %268 = vector.broadcast %267 : vector<1x8x1xf32> to vector<1x8x8xf32>
    %269 = arith.mulf %264, %268 : vector<1x8x8xf32>
    %270 = arith.truncf %269 : vector<1x8x8xf32> to vector<1x8x8xbf16>
    %271 = vector.extract_strided_slice %236 {offsets = [0, 0, 8], sizes = [1, 8, 8], strides = [1, 1, 1]} : vector<1x8x32xbf16> to vector<1x8x8xbf16>
    "tpu.trace_start"() <{level = 10 : i32, message = "bqk,bkd->bqd"}> : () -> ()
    %cst_122 = arith.constant dense<0.000000e+00> : vector<1x8x8xf32>
    %272 = tpu.matmul %270, %271, %cst_122 {dimension_numbers = #tpu.dot_dimension_numbers<[2], [1], [1], [2], [0, 0, 0, 1, 1, 2], [0], [0]>} : vector<1x8x8xbf16>, vector<1x8x8xbf16>, vector<1x8x8xf32> -> vector<1x8x8xf32>
    "tpu.trace_stop"() : () -> ()
    %273 = vector.extract_strided_slice %232 {offsets = [0, 0, 16], sizes = [1, 8, 8], strides = [1, 1, 1]} : vector<1x8x32xbf16> to vector<1x8x8xbf16>
    %274 = vector.extract_strided_slice %234 {offsets = [0, 0, 16], sizes = [1, 8, 8], strides = [1, 1, 1]} : vector<1x8x32xbf16> to vector<1x8x8xbf16>
    "tpu.trace_start"() <{level = 10 : i32, message = "bqd,bkd->bqk"}> : () -> ()
    %cst_123 = arith.constant dense<0.000000e+00> : vector<1x8x8xf32>
    %275 = tpu.matmul %273, %274, %cst_123 {dimension_numbers = #tpu.dot_dimension_numbers<[2], [2], [1], [1], [0, 0, 0, 1, 1, 1], [0], [0]>} : vector<1x8x8xbf16>, vector<1x8x8xbf16>, vector<1x8x8xf32> -> vector<1x8x8xf32>
    "tpu.trace_stop"() : () -> ()
    %cst_124 = arith.constant 0.353553385 : f32
    %276 = vector.broadcast %cst_124 : f32 to vector<1x8x8xf32>
    %277 = arith.mulf %275, %276 : vector<1x8x8xf32>
    %cst_125 = arith.constant dense<0xFF800000> : vector<1x8xf32>
    %278 = vector.multi_reduction <maximumf>, %277, %cst_125 [2] : vector<1x8x8xf32> to vector<1x8xf32>
    %279 = vector.shape_cast %278 : vector<1x8xf32> to vector<1x8x1xf32>
    %280 = vector.broadcast %279 : vector<1x8x1xf32> to vector<1x8x8xf32>
    %281 = arith.subf %277, %280 : vector<1x8x8xf32>
    %282 = math.exp %281 : vector<1x8x8xf32>
    %cst_126 = arith.constant dense<0.000000e+00> : vector<1x8xf32>
    %283 = vector.multi_reduction <add>, %282, %cst_126 [2] : vector<1x8x8xf32> to vector<1x8xf32>
    %284 = vector.shape_cast %283 : vector<1x8xf32> to vector<1x8x1xf32>
    %285 = tpu.reciprocal %284 {approx = true} : vector<1x8x1xf32> -> vector<1x8x1xf32>
    %286 = vector.broadcast %285 : vector<1x8x1xf32> to vector<1x8x8xf32>
    %287 = arith.mulf %282, %286 : vector<1x8x8xf32>
    %288 = arith.truncf %287 : vector<1x8x8xf32> to vector<1x8x8xbf16>
    %289 = vector.extract_strided_slice %236 {offsets = [0, 0, 16], sizes = [1, 8, 8], strides = [1, 1, 1]} : vector<1x8x32xbf16> to vector<1x8x8xbf16>
    "tpu.trace_start"() <{level = 10 : i32, message = "bqk,bkd->bqd"}> : () -> ()
    %cst_127 = arith.constant dense<0.000000e+00> : vector<1x8x8xf32>
    %290 = tpu.matmul %288, %289, %cst_127 {dimension_numbers = #tpu.dot_dimension_numbers<[2], [1], [1], [2], [0, 0, 0, 1, 1, 2], [0], [0]>} : vector<1x8x8xbf16>, vector<1x8x8xbf16>, vector<1x8x8xf32> -> vector<1x8x8xf32>
    "tpu.trace_stop"() : () -> ()
    %291 = vector.extract_strided_slice %232 {offsets = [0, 0, 24], sizes = [1, 8, 8], strides = [1, 1, 1]} : vector<1x8x32xbf16> to vector<1x8x8xbf16>
    %292 = vector.extract_strided_slice %234 {offsets = [0, 0, 24], sizes = [1, 8, 8], strides = [1, 1, 1]} : vector<1x8x32xbf16> to vector<1x8x8xbf16>
    "tpu.trace_start"() <{level = 10 : i32, message = "bqd,bkd->bqk"}> : () -> ()
    %cst_128 = arith.constant dense<0.000000e+00> : vector<1x8x8xf32>
    %293 = tpu.matmul %291, %292, %cst_128 {dimension_numbers = #tpu.dot_dimension_numbers<[2], [2], [1], [1], [0, 0, 0, 1, 1, 1], [0], [0]>} : vector<1x8x8xbf16>, vector<1x8x8xbf16>, vector<1x8x8xf32> -> vector<1x8x8xf32>
    "tpu.trace_stop"() : () -> ()
    %cst_129 = arith.constant 0.353553385 : f32
    %294 = vector.broadcast %cst_129 : f32 to vector<1x8x8xf32>
    %295 = arith.mulf %293, %294 : vector<1x8x8xf32>
    %cst_130 = arith.constant dense<0xFF800000> : vector<1x8xf32>
    %296 = vector.multi_reduction <maximumf>, %295, %cst_130 [2] : vector<1x8x8xf32> to vector<1x8xf32>
    %297 = vector.shape_cast %296 : vector<1x8xf32> to vector<1x8x1xf32>
    %298 = vector.broadcast %297 : vector<1x8x1xf32> to vector<1x8x8xf32>
    %299 = arith.subf %295, %298 : vector<1x8x8xf32>
    %300 = math.exp %299 : vector<1x8x8xf32>
    %cst_131 = arith.constant dense<0.000000e+00> : vector<1x8xf32>
    %301 = vector.multi_reduction <add>, %300, %cst_131 [2] : vector<1x8x8xf32> to vector<1x8xf32>
    %302 = vector.shape_cast %301 : vector<1x8xf32> to vector<1x8x1xf32>
    %303 = tpu.reciprocal %302 {approx = true} : vector<1x8x1xf32> -> vector<1x8x1xf32>
    %304 = vector.broadcast %303 : vector<1x8x1xf32> to vector<1x8x8xf32>
    %305 = arith.mulf %300, %304 : vector<1x8x8xf32>
    %306 = arith.truncf %305 : vector<1x8x8xf32> to vector<1x8x8xbf16>
    %307 = vector.extract_strided_slice %236 {offsets = [0, 0, 24], sizes = [1, 8, 8], strides = [1, 1, 1]} : vector<1x8x32xbf16> to vector<1x8x8xbf16>
    "tpu.trace_start"() <{level = 10 : i32, message = "bqk,bkd->bqd"}> : () -> ()
    %cst_132 = arith.constant dense<0.000000e+00> : vector<1x8x8xf32>
    %308 = tpu.matmul %306, %307, %cst_132 {dimension_numbers = #tpu.dot_dimension_numbers<[2], [1], [1], [2], [0, 0, 0, 1, 1, 2], [0], [0]>} : vector<1x8x8xbf16>, vector<1x8x8xbf16>, vector<1x8x8xf32> -> vector<1x8x8xf32>
    "tpu.trace_stop"() : () -> ()
    %309 = tpu.concatenate %254, %272, %290, %308 in 2 : vector<1x8x8xf32>, vector<1x8x8xf32>, vector<1x8x8xf32>, vector<1x8x8xf32> -> vector<1x8x32xf32>
    %310 = vector.shape_cast %309 : vector<1x8x32xf32> to vector<8x32xf32>
    %c0_133 = arith.constant 0 : index
    %c0_134 = arith.constant 0 : index
    %c0_135 = arith.constant 0 : index
    %311 = vector.load %arg23[%c0_133, %c0_134, %c0_135] : memref<1x32x32xbf16, #tpu.memory_space<vmem>>, vector<1x32x32xbf16>
    %312 = vector.shape_cast %311 : vector<1x32x32xbf16> to vector<32x32xbf16>
    %313 = arith.truncf %310 : vector<8x32xf32> to vector<8x32xbf16>
    %cst_136 = arith.constant dense<0.000000e+00> : vector<8x32xf32>
    %314 = tpu.matmul %313, %312, %cst_136 {dimension_numbers = #tpu.dot_dimension_numbers<[1], [0], [0], [1], [0, 0, 1, 1], [], []>} : vector<8x32xbf16>, vector<32x32xbf16>, vector<8x32xf32> -> vector<8x32xf32>
    %c0_137 = arith.constant 0 : index
    %c0_138 = arith.constant 0 : index
    %c0_139 = arith.constant 0 : index
    %315 = vector.load %arg24[%c0_137, %c0_138, %c0_139] : memref<1x1x32xf32, #tpu.memory_space<vmem>>, vector<1x1x32xf32>
    %316 = vector.shape_cast %315 : vector<1x1x32xf32> to vector<1x32xf32>
    %317 = vector.broadcast %316 : vector<1x32xf32> to vector<8x32xf32>
    %318 = arith.addf %314, %317 : vector<8x32xf32>
    %c0_140 = arith.constant 0 : index
    %c0_141 = arith.constant 0 : index
    %c1_142 = arith.constant 1 : index
    %c0_143 = arith.constant 0 : index
    %c0_144 = arith.constant 0 : index
    %319 = vector.load %arg29[%c0_140, %c0_141, %c1_142, %c0_143, %c0_144] : memref<1x1x3x2x32xf32, #tpu.memory_space<vmem>>, vector<1x1x1x1x32xf32>
    %320 = vector.shape_cast %319 : vector<1x1x1x1x32xf32> to vector<1x32xf32>
    %c0_145 = arith.constant 0 : index
    %c0_146 = arith.constant 0 : index
    %c1_147 = arith.constant 1 : index
    %c1_148 = arith.constant 1 : index
    %c0_149 = arith.constant 0 : index
    %321 = vector.load %arg29[%c0_145, %c0_146, %c1_147, %c1_148, %c0_149] : memref<1x1x3x2x32xf32, #tpu.memory_space<vmem>>, vector<1x1x1x1x32xf32>
    %322 = vector.shape_cast %321 : vector<1x1x1x1x32xf32> to vector<1x32xf32>
    %323 = vector.shape_cast %318 : vector<8x32xf32> to vector<1x8x32xf32>
    %cst_150 = arith.constant 1.000000e+00 : f32
    %324 = vector.broadcast %cst_150 : f32 to vector<1x32xf32>
    %325 = arith.addf %320, %324 : vector<1x32xf32>
    %326 = vector.shape_cast %325 : vector<1x32xf32> to vector<1x1x32xf32>
    %327 = vector.broadcast %326 : vector<1x1x32xf32> to vector<1x8x32xf32>
    %328 = arith.mulf %327, %323 : vector<1x8x32xf32>
    %329 = vector.shape_cast %322 : vector<1x32xf32> to vector<1x1x32xf32>
    %330 = vector.broadcast %329 : vector<1x1x32xf32> to vector<1x8x32xf32>
    %331 = arith.addf %328, %330 : vector<1x8x32xf32>
    %332 = vector.shape_cast %331 : vector<1x8x32xf32> to vector<8x32xf32>
    %333 = arith.addf %176, %332 : vector<8x32xf32>
    %cst_151 = arith.constant dense<0.000000e+00> : vector<8xf32>
    %334 = vector.multi_reduction <add>, %333, %cst_151 [1] : vector<8x32xf32> to vector<8xf32>
    %335 = vector.shape_cast %334 : vector<8xf32> to vector<8x1xf32>
    %cst_152 = arith.constant 3.200000e+01 : f32
    %336 = vector.broadcast %cst_152 : f32 to vector<8x1xf32>
    %337 = arith.divf %335, %336 : vector<8x1xf32>
    %338 = vector.broadcast %337 : vector<8x1xf32> to vector<8x32xf32>
    %339 = arith.subf %333, %338 : vector<8x32xf32>
    %340 = arith.mulf %339, %339 : vector<8x32xf32>
    %cst_153 = arith.constant dense<0.000000e+00> : vector<8xf32>
    %341 = vector.multi_reduction <add>, %340, %cst_153 [1] : vector<8x32xf32> to vector<8xf32>
    %342 = vector.shape_cast %341 : vector<8xf32> to vector<8x1xf32>
    %cst_154 = arith.constant 3.200000e+01 : f32
    %343 = vector.broadcast %cst_154 : f32 to vector<8x1xf32>
    %344 = arith.divf %342, %343 : vector<8x1xf32>
    %cst_155 = arith.constant 9.99999974E-6 : f32
    %345 = vector.broadcast %cst_155 : f32 to vector<8x1xf32>
    %346 = arith.addf %344, %345 : vector<8x1xf32>
    %347 = math.rsqrt %346 : vector<8x1xf32>
    %348 = vector.broadcast %347 : vector<8x1xf32> to vector<8x32xf32>
    %349 = arith.mulf %339, %348 : vector<8x32xf32>
    %350 = vector.extract_strided_slice %17 {offsets = [2, 0], sizes = [1, 32], strides = [1, 1]} : vector<3x32xf32> to vector<1x32xf32>
    %351 = vector.broadcast %350 : vector<1x32xf32> to vector<8x32xf32>
    %352 = arith.mulf %349, %351 : vector<8x32xf32>
    %353 = vector.extract_strided_slice %19 {offsets = [2, 0], sizes = [1, 32], strides = [1, 1]} : vector<3x32xf32> to vector<1x32xf32>
    %354 = vector.broadcast %353 : vector<1x32xf32> to vector<8x32xf32>
    %355 = arith.addf %352, %354 : vector<8x32xf32>
    %c0_156 = arith.constant 0 : index
    %c0_157 = arith.constant 0 : index
    %c0_158 = arith.constant 0 : index
    %356 = vector.load %arg25[%c0_156, %c0_157, %c0_158] : memref<1x32x64xbf16, #tpu.memory_space<vmem>>, vector<1x32x64xbf16>
    %357 = vector.shape_cast %356 : vector<1x32x64xbf16> to vector<32x64xbf16>
    %358 = arith.truncf %355 : vector<8x32xf32> to vector<8x32xbf16>
    %cst_159 = arith.constant dense<0.000000e+00> : vector<8x64xf32>
    %359 = tpu.matmul %358, %357, %cst_159 {dimension_numbers = #tpu.dot_dimension_numbers<[1], [0], [0], [1], [0, 0, 1, 1], [], []>} : vector<8x32xbf16>, vector<32x64xbf16>, vector<8x64xf32> -> vector<8x64xf32>
    %c0_160 = arith.constant 0 : index
    %c0_161 = arith.constant 0 : index
    %c0_162 = arith.constant 0 : index
    %360 = vector.load %arg26[%c0_160, %c0_161, %c0_162] : memref<1x1x64xf32, #tpu.memory_space<vmem>>, vector<1x1x64xf32>
    %361 = vector.shape_cast %360 : vector<1x1x64xf32> to vector<1x64xf32>
    %362 = vector.broadcast %361 : vector<1x64xf32> to vector<8x64xf32>
    %363 = arith.addf %359, %362 : vector<8x64xf32>
    %cst_163 = arith.constant 5.000000e-01 : f32
    %364 = vector.broadcast %cst_163 : f32 to vector<8x64xf32>
    %365 = arith.mulf %364, %363 : vector<8x64xf32>
    %cst_164 = arith.constant 4.471500e-02 : f32
    %366 = vector.broadcast %cst_164 : f32 to vector<8x64xf32>
    %367 = arith.mulf %366, %363 : vector<8x64xf32>
    %368 = arith.mulf %367, %363 : vector<8x64xf32>
    %369 = arith.mulf %368, %363 : vector<8x64xf32>
    %370 = arith.addf %363, %369 : vector<8x64xf32>
    %cst_165 = arith.constant 0.797884583 : f32
    %371 = vector.broadcast %cst_165 : f32 to vector<8x64xf32>
    %372 = arith.mulf %371, %370 : vector<8x64xf32>
    %373 = math.tanh %372 : vector<8x64xf32>
    %cst_166 = arith.constant 1.000000e+00 : f32
    %374 = vector.broadcast %cst_166 : f32 to vector<8x64xf32>
    %375 = arith.addf %374, %373 : vector<8x64xf32>
    %376 = arith.mulf %365, %375 : vector<8x64xf32>
    %c0_167 = arith.constant 0 : index
    %c0_168 = arith.constant 0 : index
    %c0_169 = arith.constant 0 : index
    %377 = vector.load %arg27[%c0_167, %c0_168, %c0_169] : memref<1x64x32xbf16, #tpu.memory_space<vmem>>, vector<1x64x32xbf16>
    %378 = vector.shape_cast %377 : vector<1x64x32xbf16> to vector<64x32xbf16>
    %379 = arith.truncf %376 : vector<8x64xf32> to vector<8x64xbf16>
    %cst_170 = arith.constant dense<0.000000e+00> : vector<8x32xf32>
    %380 = tpu.matmul %379, %378, %cst_170 {dimension_numbers = #tpu.dot_dimension_numbers<[1], [0], [0], [1], [0, 0, 1, 1], [], []>} : vector<8x64xbf16>, vector<64x32xbf16>, vector<8x32xf32> -> vector<8x32xf32>
    %c0_171 = arith.constant 0 : index
    %c0_172 = arith.constant 0 : index
    %c0_173 = arith.constant 0 : index
    %381 = vector.load %arg28[%c0_171, %c0_172, %c0_173] : memref<1x1x32xf32, #tpu.memory_space<vmem>>, vector<1x1x32xf32>
    %382 = vector.shape_cast %381 : vector<1x1x32xf32> to vector<1x32xf32>
    %383 = vector.broadcast %382 : vector<1x32xf32> to vector<8x32xf32>
    %384 = arith.addf %380, %383 : vector<8x32xf32>
    %c0_174 = arith.constant 0 : index
    %c0_175 = arith.constant 0 : index
    %c2 = arith.constant 2 : index
    %c0_176 = arith.constant 0 : index
    %c0_177 = arith.constant 0 : index
    %385 = vector.load %arg29[%c0_174, %c0_175, %c2, %c0_176, %c0_177] : memref<1x1x3x2x32xf32, #tpu.memory_space<vmem>>, vector<1x1x1x1x32xf32>
    %386 = vector.shape_cast %385 : vector<1x1x1x1x32xf32> to vector<1x32xf32>
    %c0_178 = arith.constant 0 : index
    %c0_179 = arith.constant 0 : index
    %c2_180 = arith.constant 2 : index
    %c1_181 = arith.constant 1 : index
    %c0_182 = arith.constant 0 : index
    %387 = vector.load %arg29[%c0_178, %c0_179, %c2_180, %c1_181, %c0_182] : memref<1x1x3x2x32xf32, #tpu.memory_space<vmem>>, vector<1x1x1x1x32xf32>
    %388 = vector.shape_cast %387 : vector<1x1x1x1x32xf32> to vector<1x32xf32>
    %389 = vector.shape_cast %384 : vector<8x32xf32> to vector<1x8x32xf32>
    %cst_183 = arith.constant 1.000000e+00 : f32
    %390 = vector.broadcast %cst_183 : f32 to vector<1x32xf32>
    %391 = arith.addf %386, %390 : vector<1x32xf32>
    %392 = vector.shape_cast %391 : vector<1x32xf32> to vector<1x1x32xf32>
    %393 = vector.broadcast %392 : vector<1x1x32xf32> to vector<1x8x32xf32>
    %394 = arith.mulf %393, %389 : vector<1x8x32xf32>
    %395 = vector.shape_cast %388 : vector<1x32xf32> to vector<1x1x32xf32>
    %396 = vector.broadcast %395 : vector<1x1x32xf32> to vector<1x8x32xf32>
    %397 = arith.addf %394, %396 : vector<1x8x32xf32>
    %398 = vector.shape_cast %397 : vector<1x8x32xf32> to vector<8x32xf32>
    %399 = arith.addf %333, %398 : vector<8x32xf32>
    %400 = vector.shape_cast %399 : vector<8x32xf32> to vector<1x8x32xf32>
    %c0_184 = arith.constant 0 : index
    %c0_185 = arith.constant 0 : index
    %c0_186 = arith.constant 0 : index
    %401 = vector.load %arg30[%c0_184, %c0_185, %c0_186] : memref<1x8x32xf32, #tpu.memory_space<vmem>>, vector<1x8x32xf32>
    tpu.vector_store %arg30[%c0_184, %c0_185, %c0_186], %400 {strides = array<i32>} : memref<1x8x32xf32, #tpu.memory_space<vmem>>, vector<1x8x32xf32>,
    return
  }
  func.func @transform_0(%arg0: i32, %arg1: i32) -> (i32, i32, i32) {
    %c0_i32 = arith.constant 0 : i32
    %c0_i32_0 = arith.constant 0 : i32
    %c0_i32_1 = arith.constant 0 : i32
    return %arg0, %c0_i32, %c0_i32_0 : i32, i32, i32
  }
  func.func @transform_1(%arg0: i32, %arg1: i32) -> (i32, i32, i32) {
    %c0_i32 = arith.constant 0 : i32
    %c0_i32_0 = arith.constant 0 : i32
    %c0_i32_1 = arith.constant 0 : i32
    return %arg0, %c0_i32, %c0_i32_0 : i32, i32, i32
  }
  func.func @transform_2(%arg0: i32, %arg1: i32) -> (i32, i32, i32) {
    %c0_i32 = arith.constant 0 : i32
    %c0_i32_0 = arith.constant 0 : i32
    %c0_i32_1 = arith.constant 0 : i32
    return %arg0, %c0_i32, %c0_i32_0 : i32, i32, i32
  }
  func.func @transform_3(%arg0: i32, %arg1: i32) -> (i32, i32) {
    %c0_i32 = arith.constant 0 : i32
    %c0_i32_0 = arith.constant 0 : i32
    %c0_i32_1 = arith.constant 0 : i32
    return %c0_i32, %c0_i32_0 : i32, i32
  }
  func.func @transform_4(%arg0: i32, %arg1: i32) -> (i32, i32) {
    %c0_i32 = arith.constant 0 : i32
    %c0_i32_0 = arith.constant 0 : i32
    %c0_i32_1 = arith.constant 0 : i32
    return %c0_i32, %c0_i32_0 : i32, i32
  }
  func.func @transform_5(%arg0: i32, %arg1: i32) -> (i32, i32, i32) {
    %c0_i32 = arith.constant 0 : i32
    %c0_i32_0 = arith.constant 0 : i32
    %c0_i32_1 = arith.constant 0 : i32
    return %arg1, %c0_i32, %c0_i32_0 : i32, i32, i32
  }
  func.func @transform_6(%arg0: i32, %arg1: i32) -> (i32, i32, i32) {
    %c0_i32 = arith.constant 0 : i32
    %c0_i32_0 = arith.constant 0 : i32
    %c0_i32_1 = arith.constant 0 : i32
    return %arg1, %c0_i32, %c0_i32_0 : i32, i32, i32
  }
  func.func @transform_7(%arg0: i32, %arg1: i32) -> (i32, i32, i32) {
    %c0_i32 = arith.constant 0 : i32
    %c0_i32_0 = arith.constant 0 : i32
    %c0_i32_1 = arith.constant 0 : i32
    return %arg1, %c0_i32, %c0_i32_0 : i32, i32, i32
  }
  func.func @transform_8(%arg0: i32, %arg1: i32) -> (i32, i32, i32) {
    %c0_i32 = arith.constant 0 : i32
    %c0_i32_0 = arith.constant 0 : i32
    %c0_i32_1 = arith.constant 0 : i32
    return %arg1, %c0_i32, %c0_i32_0 : i32, i32, i32
  }
  func.func @transform_9(%arg0: i32, %arg1: i32) -> (i32, i32, i32) {
    %c0_i32 = arith.constant 0 : i32
    %c0_i32_0 = arith.constant 0 : i32
    %c0_i32_1 = arith.constant 0 : i32
    return %arg1, %c0_i32, %c0_i32_0 : i32, i32, i32
  }
  func.func @transform_10(%arg0: i32, %arg1: i32) -> (i32, i32, i32) {
    %c0_i32 = arith.constant 0 : i32
    %c0_i32_0 = arith.constant 0 : i32
    %c0_i32_1 = arith.constant 0 : i32
    return %arg1, %c0_i32, %c0_i32_0 : i32, i32, i32
  }
  func.func @transform_11(%arg0: i32, %arg1: i32) -> (i32, i32, i32) {
    %c0_i32 = arith.constant 0 : i32
    %c0_i32_0 = arith.constant 0 : i32
    %c0_i32_1 = arith.constant 0 : i32
    return %arg1, %c0_i32, %c0_i32_0 : i32, i32, i32
  }
  func.func @transform_12(%arg0: i32, %arg1: i32) -> (i32, i32, i32) {
    %c0_i32 = arith.constant 0 : i32
    %c0_i32_0 = arith.constant 0 : i32
    %c0_i32_1 = arith.constant 0 : i32
    return %arg1, %c0_i32, %c0_i32_0 : i32, i32, i32
  }
  func.func @transform_13(%arg0: i32, %arg1: i32) -> (i32, i32, i32) {
    %c0_i32 = arith.constant 0 : i32
    %c0_i32_0 = arith.constant 0 : i32
    %c0_i32_1 = arith.constant 0 : i32
    return %arg1, %c0_i32, %c0_i32_0 : i32, i32, i32
  }
  func.func @transform_14(%arg0: i32, %arg1: i32) -> (i32, i32, i32) {
    %c0_i32 = arith.constant 0 : i32
    %c0_i32_0 = arith.constant 0 : i32
    %c0_i32_1 = arith.constant 0 : i32
    return %arg1, %c0_i32, %c0_i32_0 : i32, i32, i32
  }
  func.func @transform_15(%arg0: i32, %arg1: i32) -> (i32, i32, i32) {
    %c0_i32 = arith.constant 0 : i32
    %c0_i32_0 = arith.constant 0 : i32
    %c0_i32_1 = arith.constant 0 : i32
    return %arg1, %c0_i32, %c0_i32_0 : i32, i32, i32
  }
  func.func @transform_16(%arg0: i32, %arg1: i32) -> (i32, i32, i32) {
    %c0_i32 = arith.constant 0 : i32
    %c0_i32_0 = arith.constant 0 : i32
    %c0_i32_1 = arith.constant 0 : i32
    return %arg1, %c0_i32, %c0_i32_0 : i32, i32, i32
  }
  func.func @transform_17(%arg0: i32, %arg1: i32) -> (i32, i32, i32) {
    %c0_i32 = arith.constant 0 : i32
    %c0_i32_0 = arith.constant 0 : i32
    %c0_i32_1 = arith.constant 0 : i32
    return %arg1, %c0_i32, %c0_i32_0 : i32, i32, i32
  }
  func.func @transform_18(%arg0: i32, %arg1: i32) -> (i32, i32, i32) {
    %c0_i32 = arith.constant 0 : i32
    %c0_i32_0 = arith.constant 0 : i32
    %c0_i32_1 = arith.constant 0 : i32
    return %arg1, %c0_i32, %c0_i32_0 : i32, i32, i32
  }
  func.func @transform_19(%arg0: i32, %arg1: i32) -> (i32, i32, i32) {
    %c0_i32 = arith.constant 0 : i32
    %c0_i32_0 = arith.constant 0 : i32
    %c0_i32_1 = arith.constant 0 : i32
    return %arg1, %c0_i32, %c0_i32_0 : i32, i32, i32
  }
  func.func @transform_20(%arg0: i32, %arg1: i32) -> (i32, i32, i32) {
    %c0_i32 = arith.constant 0 : i32
    %c0_i32_0 = arith.constant 0 : i32
    %c0_i32_1 = arith.constant 0 : i32
    return %arg1, %c0_i32, %c0_i32_0 : i32, i32, i32
  }
  func.func @transform_21(%arg0: i32, %arg1: i32) -> (i32, i32, i32) {
    %c0_i32 = arith.constant 0 : i32
    %c0_i32_0 = arith.constant 0 : i32
    %c0_i32_1 = arith.constant 0 : i32
    return %arg1, %c0_i32, %c0_i32_0 : i32, i32, i32
  }
  func.func @transform_22(%arg0: i32, %arg1: i32) -> (i32, i32, i32) {
    %c0_i32 = arith.constant 0 : i32
    %c0_i32_0 = arith.constant 0 : i32
    %c0_i32_1 = arith.constant 0 : i32
    return %arg1, %c0_i32, %c0_i32_0 : i32, i32, i32
  }
  func.func @transform_23(%arg0: i32, %arg1: i32) -> (i32, i32, i32) {
    %c0_i32 = arith.constant 0 : i32
    %c0_i32_0 = arith.constant 0 : i32
    %c0_i32_1 = arith.constant 0 : i32
    return %arg1, %c0_i32, %c0_i32_0 : i32, i32, i32
  }
  func.func @transform_24(%arg0: i32, %arg1: i32) -> (i32, i32, i32) {
    %c0_i32 = arith.constant 0 : i32
    %c0_i32_0 = arith.constant 0 : i32
    %c0_i32_1 = arith.constant 0 : i32
    return %arg1, %c0_i32, %c0_i32_0 : i32, i32, i32
  }
  func.func @transform_25(%arg0: i32, %arg1: i32) -> (i32, i32, i32) {
    %c0_i32 = arith.constant 0 : i32
    %c0_i32_0 = arith.constant 0 : i32
    %c0_i32_1 = arith.constant 0 : i32
    return %arg1, %c0_i32, %c0_i32_0 : i32, i32, i32
  }
  func.func @transform_26(%arg0: i32, %arg1: i32) -> (i32, i32, i32) {
    %c0_i32 = arith.constant 0 : i32
    %c0_i32_0 = arith.constant 0 : i32
    %c0_i32_1 = arith.constant 0 : i32
    return %arg1, %c0_i32, %c0_i32_0 : i32, i32, i32
  }
  func.func @transform_27(%arg0: i32, %arg1: i32) -> (i32, i32, i32, i32, i32) {
    %c0_i32 = arith.constant 0 : i32
    %c0_i32_0 = arith.constant 0 : i32
    %c0_i32_1 = arith.constant 0 : i32
    %c0_i32_2 = arith.constant 0 : i32
    return %arg1, %arg0, %c0_i32, %c0_i32_0, %c0_i32_1 : i32, i32, i32, i32, i32
  }
  func.func @transform_28(%arg0: i32, %arg1: i32) -> (i32, i32, i32) {
    %c0_i32 = arith.constant 0 : i32
    %c0_i32_0 = arith.constant 0 : i32
    %c0_i32_1 = arith.constant 0 : i32
    return %arg0, %c0_i32, %c0_i32_0 : i32, i32, i32
  }
}

</mosaic_0001>

<bundles_post_ra>
// kernel: decoder_layer_stack_forward.1
= control target key start
LH: loop header
LB: loop body
LE: loop exit
PB: predicated region body
PF: predicated region fallthrough
CT: control target
= control target key end

     0   :  { %s4835_s0 = inlined_call_operand.vmem [shape: f32[2,8,32], index: 0, kind: input, shape index: {}]   ;;  %s4836_s1 = inlined_call_operand.vmem [shape: f32[2,8,32], index: 1, kind: input, shape index: {}]   ;;  %s4837_s2 = inlined_call_operand.vmem [shape: f32[2,8,32], index: 2, kind: input, shape index: {}]   ;;  %s4838_s3 = inlined_call_operand.vmem [shape: f32[8,32], index: 3, kind: input, shape index: {}]   ;;  %s4839_s4 = inlined_call_operand.vmem [shape: f32[8,32], index: 4, kind: input, shape index: {}]   ;;  %s4840_s5 = inlined_call_operand.vmem [shape: f32[4,3,32], index: 5, kind: input, shape index: {}]   ;;  %s4841_s6 = inlined_call_operand.vmem [shape: f32[4,3,32], index: 6, kind: input, shape index: {}]   ;;  %s4842_s7 = inlined_call_operand.vmem [shape: bf16[4,32,32], index: 7, kind: input, shape index: {}]   ;;  %s4843_s8 = inlined_call_operand.vmem [shape: f32[4,1,32], index: 8, kind: input, shape index: {}]   ;;  %s4844_s9 = inlined_call_operand.vmem [shape: bf16[4,32,32], index: 9, kind: input, shape index: {}]   ;;  %s4845_s10 = inlined_call_operand.vmem [shape: f32[4,1,32], index: 10, kind: input, shape index: {}]   ;;  %s4846_s11 = inlined_call_operand.vmem [shape: bf16[4,32,32], index: 11, kind: input, shape index: {}]   ;;  %s4847_s12 = inlined_call_operand.vmem [shape: f32[4,1,32], index: 12, kind: input, shape index: {}]   ;;  %s4848_s13 = inlined_call_operand.vmem [shape: bf16[4,32,32], index: 13, kind: input, shape index: {}]   ;;  %s4849_s14 = inlined_call_operand.vmem [shape: f32[4,1,32], index: 14, kind: input, shape index: {}]   ;;  %s4850_s15 = inlined_call_operand.vmem [shape: bf16[4,32,32], index: 15, kind: input, shape index: {}]   ;;  %s4851_s16 = inlined_call_operand.vmem [shape: f32[4,1,32], index: 16, kind: input, shape index: {}]   ;;  %s4852_s17 = inlined_call_operand.vmem [shape: bf16[4,32,32], index: 17, kind: input, shape index: {}]   ;;  %s4853_s18 = inlined_call_operand.vmem [shape: f32[4,1,32], index: 18, kind: input, shape index: {}]   ;;  %s4854_s19 = inlined_call_operand.vmem [shape: bf16[4,32,32], index: 19, kind: input, shape index: {}]   ;;  %s4855_s20 = inlined_call_operand.vmem [shape: f32[4,1,32], index: 20, kind: input, shape index: {}]   ;;  %s4856_s21 = inlined_call_operand.vmem [shape: bf16[4,32,32], index: 21, kind: input, shape index: {}]   ;;  %s4857_s22 = inlined_call_operand.vmem [shape: f32[4,1,32], index: 22, kind: input, shape index: {}]   ;;  %s4858_s23 = inlined_call_operand.vmem [shape: bf16[4,32,64], index: 23, kind: input, shape index: {}]   ;;  %s4859_s24 = inlined_call_operand.vmem [shape: f32[4,1,64], index: 24, kind: input, shape index: {}]   ;;  %s4860_s25 = inlined_call_operand.vmem [shape: bf16[4,64,32], index: 25, kind: input, shape index: {}]   ;;  %s4861_s26 = inlined_call_operand.vmem [shape: f32[4,1,32], index: 26, kind: input, shape index: {}]   ;;  %s4862_s27 = inlined_call_operand.vmem [shape: f32[4,2,3,2,32], index: 27, kind: input, shape index: {}]   ;;  %s4863_s28 = inlined_call_operand.hbm [shape: f32[2,8,32], index: 28, kind: output, shape index: {}]  }
   0x1   :  { %4885 = sst [smem:[#allocation24_spill]] %s4835_s0 }
   0x2   :  { %4886 = sst [smem:[#allocation25_spill]] %s4836_s1 }
   0x3   :  { %4887 = sst [smem:[#allocation26_spill]] %s4837_s2 }
   0x4   :  { %4888 = sst [smem:[#allocation27_spill]] %s4838_s3 }
   0x5   :  { %4889 = sst [smem:[#allocation28_spill]] %s4839_s4 }
   0x6   :  { %4890 = sst [smem:[#allocation29_spill]] %s4840_s5 }
   0x7   :  { %4891 = sst [smem:[#allocation30_spill]] %s4841_s6 }
   0x8   :  { %4892 = sst [smem:[#allocation31_spill]] %s4842_s7 }
   0x9   :  { %4893 = sst [smem:[#allocation32_spill]] %s4843_s8 }
   0xa   :  { %4894 = sst [smem:[#allocation33_spill]] %s4844_s9 }
   0xb   :  { %4895 = sst [smem:[#allocation34_spill]] %s4845_s10 }
   0xc   :  { %4896 = sst [smem:[#allocation35_spill]] %s4846_s11 }
   0xd   :  { %4897 = sst [smem:[#allocation36_spill]] %s4847_s12 }
   0xe   :  { %4898 = sst [smem:[#allocation37_spill]] %s4848_s13 }
   0xf   :  { %4899 = sst [smem:[#allocation38_spill]] %s4850_s15 }
  0x10   :  { %4900 = sst [smem:[#allocation39_spill]] %s4851_s16 }
  0x11   :  { %4901 = sst [smem:[#allocation40_spill]] %s4852_s17 }
  0x12   :  { %4902 = sst [smem:[#allocation41_spill]] %s4853_s18 }
  0x13   :  { %4903 = sst [smem:[#allocation42_spill]] %s4854_s19 }
  0x14   :  { %4904 = sst [smem:[#allocation43_spill]] %s4855_s20 }
  0x15   :  { %4905 = sst [smem:[#allocation44_spill]] %s4856_s21 }
  0x16   :  { %4906 = sst [smem:[#allocation45_spill]] %s4857_s22 }
  0x17   :  { %4907 = sst [smem:[#allocation46_spill]] %s4858_s23 }
  0x18   :  { %4908 = sst [smem:[#allocation47_spill]] %s4859_s24 }
  0x19   :  { %4909 = sst [smem:[#allocation48_spill]] %s4860_s25 }
  0x1a   :  { %4910 = sst [smem:[#allocation49_spill]] %s4861_s26 }
  0x1b   :  { %4911 = sst [smem:[#allocation50_spill]] %s4862_s27 }
  0x1c   :  { %4912 = sst [smem:[#allocation51_spill]] %s4863_s28 }
  0x1d   :  { %33 = vsyncpa [#allocation3], 0 }
  0x1e   :  { %35 = vsyncpa [#allocation3 + $0x1], 0  ;;  %s4203_s8 = smov 0   ;;  %s4205_s5 = smov 0  }
  0x1f   :  { %s4207_s9 = smov 0   ;;  %s4209_s30 = smov 0  }
  0x20   :  { %s4211_s3 = smov 0   ;;  %s4213_s6 = smov 0  }
  0x21   :  { %s4215_s10 = smov 0   ;;  %s4217_s0 = smov 0  }
  0x22 LB: > { %4913 = sst [smem:[#allocation5_spill]] %s4016_s8  ;;  %s3446_s11 = sadd.s32 4294967295, %s4044_s0   ;;  %s4044_s0 = sphi %s4217_s0, %s41_s0   ;;  %s4040_s10 = sphi %s4215_s10, %s5008_s10   ;;  %s4036_s6 = sphi %s4213_s6, %s5007_s6   ;;  %s4032_s3 = sphi %s4211_s3, %s5006_s3   ;;  %s4028_s30 = sphi %s4209_s30, %s5005_s30   ;;  %s4024_s9 = sphi %s4207_s9, %s5004_s9   ;;  %s4020_s5 = sphi %s4205_s5, %s5003_s5   ;;  %s4016_s8 = sphi %s4203_s8, %s5002_s8  }
  0x23   : > { %4914 = sst [smem:[#allocation6_spill]] %s4020_s5  ;;  %s3447_s29 = sadd.s32 4294967294, %s4044_s0  }
  0x24   : > { %4915 = sst [smem:[#allocation7_spill]] %s4024_s9  ;;  %s50_s2 = sadd.s32 1, %s4036_s6 }
  0x25   : > { %4916 = sst [smem:[#allocation8_spill]] %s4028_s30  ;;  %p51_p0 = scmp.ge.s32.totalorder %s50_s2, 4 }
  0x26   : > { %4917 = sst [smem:[#allocation9_spill]] %s4032_s3  ;;  %s53_s7 = sadd.s32 1, %s4040_s10 }
  0x27   : > { %4918 = sst [smem:[#allocation10_spill]] %s4036_s6  ;;  %p790_p1 = scmp.ne.s32.totalorder %s4024_s9, %s4020_s5 }
  0x28   : > { %4919 = sst [smem:[#allocation11_spill]] %s4040_s10  ;;  %p791_p2 = scmp.eq.s32.totalorder %s3446_s11, 7 }
  0x29   : > { %4920 = sst [smem:[#allocation12_spill]] %s4044_s0  ;;  %s5010_s2 = smov (%p51_p0, %s50_s2), 0 }
  0x2a   : > { %4921 = sst [smem:[#allocation13_spill]] %s5010_s2  ;;  %s5012_s7 = smov (!%p51_p0, %s53_s7), %s4040_s10 }
  0x2b   : > { %p4252_p3 = por %p791_p2, %p790_p1  ;;  %p796_p4 = scmp.ne.s32.totalorder %s4020_s5, %s4016_s8 }
  0x2c   : > { %p55_p5 = scmp.ge.s32.totalorder %s5012_s7, 2  ;;  %p797_p6 = scmp.eq.s32.totalorder %s3447_s29, 7 }
  0x2d   : > { %s4922_s12 = scalar_select %p4252_p3, 1, 0 }
  0x2e   : > { %p3450_p7 = scmp.ge.s32.totalorder %s4044_s0, 1  ;;  %p1008_p8 = scmp.lt.s32.totalorder %s4044_s0, 9 }
  0x2f   : > { %4923 = sst [smem:[#allocation14_spill]] %s4922_s12  ;;  %s5014_s7 = smov (%p55_p5, %s5012_s7), 0 }
  0x30   : > { %4924 = sst [smem:[#allocation15_spill]] %s5014_s7  ;;  %p4262_p9 = por %p797_p6, %p796_p4 }
  0x31   : > { %p1009_p10 = pnand %p3450_p7, %p1008_p8  ;;  %s777_s4 = ssub.s32 %s4040_s10, %s5014_s7 }
  0x32   : > { %s4925_s1 = scalar_select %p4262_p9, 1, 0 }
  0x33   : > { %s780_s11 = sadd.s32 1, %s4024_s9  ;;  %p778_p11 = scmp.eq.s32.totalorder %s777_s4, 0 }
  0x34   : > { %4926 = sst [smem:[#allocation16_spill]] %s4925_s1  ;;  %1012 = sbr.rel (%p1009_p10) target bundleno = 5167 (0x142f), region = 132 }
  0x35   : > { %s4270_s2 = scalar_select %p778_p11, %s4024_s9, %s780_s11  }
  0x37   : > { %4927 = sst [smem:[#allocation17_spill]] %s4270_s2 }
  0x3b   : > { %s4866_s29 = sand.u32 1, %s4020_s5   ;;  %p1186_p12 = scmp.lt.s32.totalorder %s4032_s3, 1 }
  0x3c   : > { %s4276_s6 = sshll.u32 %s4866_s29, 3  ;;  %p1198_p13 = scmp.lt.s32.totalorder %s4028_s30, 3 }
  0x3d   : > { %s4280_s1 = scalar_select %p1186_p12, %s4032_s3, 1 }
  0x3e   : > { %s4283_s4 = scalar_select %p1198_p13, %s4028_s30, 3 }
  0x3f   : > { %s4286_s11 = sshll.u32 %s4280_s1, 3  ;;  %s4931_s23 = sld [smem:[#allocation29_spill]] }
  0x40   : > { %s3455_s26 = sshll.u32 %s4283_s4, 2  ;;  %s4932_s10 = sld [smem:[#allocation30_spill]] }
  0x41   : > { %s3548_s8 = sshll.u32 %s4283_s4, 4  ;;  %s4935_s12 = sld [smem:[#allocation31_spill]] }
  0x42   : > { %s4937_s25 = sld [smem:[#allocation33_spill]]  ;;  %s4939_s28 = sld [smem:[#allocation35_spill]] }
  0x43   : > { %s4941_s13 = sld [smem:[#allocation37_spill]]  ;;  %s4942_s15 = sld [smem:[#allocation38_spill]] }
  0x44   : > { %s4945_s17 = sld [smem:[#allocation40_spill]]  ;;  %s4947_s19 = sld [smem:[#allocation42_spill]] }
  0x45   : > { %s4305_s22 = scalar_lea.vmem %s4931_s23, %s3455_s26  ;;  %s4956_s20 = sld [smem:[#allocation48_spill]] }
  0x46   : > { %s4310_s2 = scalar_lea.vmem %s4932_s10, %s3455_s26  ;;  %s3803_s16 = smul.u32 6, %s4283_s4 }
  0x47   : > { %4933 = sst [smem:[#allocation18_spill]] %s4310_s2  ;;  %s4320_s27 = scalar_lea.vmem %s4935_s12, %s3548_s8 }
  0x48   : > { %4936 = sst [smem:[#allocation19_spill]] %s4320_s27  ;;  %s4325_s9 = scalar_lea.vmem %s4937_s25, %s3548_s8 }
  0x49   : > { %s4334_s7 = scalar_lea.vmem %s4939_s28, %s3548_s8  ;;  %s4343_s23 = scalar_lea.vmem %s4941_s13, %s3548_s8 }
  0x4a   : > { %s4352_s0 = scalar_lea.vmem %s4942_s15, %s3548_s8  ;;  %s4361_s27 = scalar_lea.vmem %s4945_s17, %s3548_s8 }
  0x4b   : > { %4943 = sst [smem:[#allocation20_spill]] %s4352_s0  ;;  %s4370_s29 = scalar_lea.vmem %s4947_s19, %s3548_s8 }
  0x4c   : > { %4948 = sst [smem:[#allocation21_spill]] %s4370_s29  ;;  %s4953_s25 = sld [smem:[#allocation46_spill]] }
  0x4d   : > { %s4950_s15 = sld [smem:[#allocation44_spill]]  ;;  %s4955_s19 = sld [smem:[#allocation47_spill]] }
  0x4e   : > { %s3557_s13 = sshll.u32 %s4283_s4, 5  ;;  %s4958_s12 = smul.u32 3, %s4280_s1 }
  0x4f   : > { %s4398_s30 = scalar_lea.vmem %s4956_s20, %s3557_s13  ;;  %s4959_s24 = sld [smem:[#allocation50_spill]] }
  0x50   : > { %s1292_s0 = sadd.s32 %s3803_s16, %s4958_s12  ;;  %s4960_s26 = sld [smem:[#allocation8_spill]] }
  0x51   : > { %s3477_s10 = sshll.u32 %s1292_s0, 1 }
  0x52   : > { %s4388_s18 = scalar_lea.vmem %s4953_s25, %s3548_s8 }
  0x53   : > { %s4379_s3 = scalar_lea.vmem %s4950_s15, %s3548_s8  ;;  %4954 = sst [smem:[#allocation23_spill]] %s4388_s18 }
  0x54   : > { %4951 = sst [smem:[#allocation22_spill]] %s4379_s3  ;;  %s1277_s29 = scalar_lea.vmem %s4955_s19, %s4283_s4 }
  0x55   : > { %s4957_s3 = sld [smem:[#allocation49_spill]]  ;;  %s4410_s18 = scalar_lea.vmem %s4959_s24, %s3477_s10 }
  0x56   : > { %s4413_s19 = scalar_lea.vmem [#allocation2], %s4276_s6  ;;  %p3478_p0 = scmp.ne.s32.totalorder %s4960_s26, 0 }
  0x57   : > { %s4961_s21 = sld [smem:[#allocation24_spill]] (!%p3478_p0)  ;;  %vm1301_vm0 = vcmask (!%p3478_p0), 261120  }
  0x58   : > { %1299 = sbr.rel (%p3478_p0) target bundleno = 96 (0x60), region = 136 }
  0x5b   : > { %s1285_s17 = scalar_lea.vmem %s4957_s3, %s4283_s4 }
  0x5d   : > { %s4962_s13 = scalar_lea.vmem (!%p3478_p0), %s4961_s21, %s4286_s11 }
  0x5e   : > { %v1300_v0 = vld [vmem:[%s4962_s13] sm:$0xff] (!%p3478_p0) }
  0x5f   : > { %1302 = vst.msk [vmem:[%s4413_s19] sm:$0xff] %vm1301_vm0, %v1300_v0 }
  0x60 PF: > { %vm1314_vm1 = vcmask 261120   ;;  %s4963_s6 = sld [smem:[#allocation18_spill]]  ;;  %v1308_v10 = vlaneseq  ;;  %v4435_v14 = vld [vmem:[%s4305_s22] sm:$0x7]  ;;  %s4964_s1 = sld [smem:[#allocation19_spill]]  ;;  %vm1339_vm2 = vcmask 1047808  }
  0x61   : > { %s4046_s0 = smov 32   ;;  %v4047_v24 = vmov 0.0   ;;  %v3887_v26 = vld [vmem:[%s4325_s9] sm:$0xff]   ;;  %v3889_v28 = vld [vmem:[%s4325_s9 + $0x8] sm:$0xff]   ;;  %vm4048_vm3 = vmmov 0   ;;  %s4049_s3 = smov 97  }
  0x62   : > { %v4429_v12 = vshrl.u32 %v1308_v10, 7  ;;  %3622 = vmatprep.subr.bf16.mxu0 %v4047_v24  ;;  %3630 = vmatprep.subr.bf16.mxu1 %v4047_v24  ;;  %s4050_s9 = smov 127   ;;  %v1309_v32 = vand.u32 127, %v1308_v10  ;;  %s4967_s5 = sld [smem:[#allocation27_spill]]  ;;  %v3890_v43 = vld [vmem:[%s4334_s7] sm:$0xff]   ;;  %v3891_v45 = vld [vmem:[%s4334_s7 + $0x8] sm:$0xff]  }
  0x63   : > { %3631 = vmatpush3.bf16.msra.mxu1 %v3887_v26  ;;  %3626 = vmatprep.mubr.msk.bf16.mxu0 %vm4048_vm3, %v4047_v24  ;;  %s4968_s10 = sld [smem:[#allocation28_spill]]  ;;  %s4969_s7 = sld [smem:[#allocation32_spill]]  ;;  %vm1559_vm5 = vcmask 64512   ;;  %vm1622_vm6 = vcmask 1043456   ;;  %vm2015_vm7 = vcmask 130048   ;;  %vm2017_vm8 = vcmask 195584  }
  0x64   : > { %v4432_v13 = vsub.s32 0, %v4429_v12  ;;  %3632 = vmatprep.subr.bf16.mxu1 %v4047_v24  ;;  %3634 = vmatprep.mubr.msk.bf16.mxu1 %vm4048_vm3, %v4047_v24  ;;  %v1310_v33 = vand.u32 1, %v1309_v32  ;;  %s4971_s28 = sld [smem:[#allocation34_spill]]  ;;  %s4051_s13 = smov 120   ;;  %vm3023_vm9 = vcmask 523264  }
  0x65   : > { %s4053_s12 = smov 112   ;;  %s4055_s8 = smov 16  }
  0x66   : > { %v4423_v1 = vld [vmem:[%s4413_s19] sm:$0xff]  ;;  %v1332_v16 = vrot.slane %v4435_v14, %v4432_v13  ;;  %vm4464_vm4 = vcmp.eq.s32.totalorder %v1310_v33, 0  ;;  %s4056_s25 = smov 24   ;;  %s4976_s26 = sld [smem:[#allocation20_spill]] }
  0x67   : > { %v1315_v2 = vsel %vm1314_vm1, %v4423_v1, 0.0  ;;  %v4438_v15 = vld [vmem:[%s4963_s6] sm:$0x7]  ;;  %v3888_v27 = vld [vmem:[%s4964_s1 + $0x8] sm:$0xff]   ;;  %3633 = vmatpush3.bf16.msra.mxu1 %v3889_v28  ;;  %s4979_s15 = sld [smem:[#allocation41_spill]] }
  0x68   : > { %1316 = vadd.xlane.f32.xlu0 %v1315_v2  ;;  %v1337_v19 = vrot.slane %v4438_v15, %v4432_v13  ;;  %v3886_v25 = vld [vmem:[%s4964_s1] sm:$0xff]   ;;  %3646 = vmatprep.subr.bf16.mxu1 %v4047_v24  ;;  %s4052_s1 = smov 104   ;;  %s4984_s20 = sld [smem:[#allocation25_spill]] }
  0x69   : > { %3623 = vmatpush3.bf16.msra.mxu0 %v3886_v25  ;;  %v4471_v35 = vld [vmem:[%s4967_s5] sm:$0xff]  ;;  %s4970_s24 = scalar_lea.vmem %s4969_s7, %s4283_s4  ;;  %s4973_s5 = sld [smem:[#allocation36_spill]] }
  0x6a   : > { %3624 = vmatprep.subr.bf16.mxu0 %v4047_v24  ;;  %v4476_v36 = vld [vmem:[%s4968_s10] sm:$0xff]  ;;  %s4972_s21 = scalar_lea.vmem %s4971_s28, %s4283_s4  ;;  %s4054_s10 = smov 8  }
  0x6b   : > { %v3479_v47 = vld [vmem:[%s4970_s24] ss:$0 sm:$0xff]  ;;  %s4975_s24 = scalar_lea.vmem %s4849_s14, %s4283_s4  ;;  %s4983_s7 = sld [smem:[#allocation21_spill]] }
  0x6c   : > { %v3483_v48 = vld [vmem:[%s4972_s21] ss:$0 sm:$0xff]  ;;  %s4977_s21 = sld [smem:[#allocation26_spill]] }
  0x6d   : > { %3625 = vmatpush3.bf16.msra.mxu0 %v3888_v27 }
  0x6e   : > { %3638 = vmatprep.subr.bf16.mxu0 %v4047_v24  ;;  %s4985_s28 = scalar_lea.vmem %s4984_s20, %s4286_s11 }
  0x6f   : > { %s4974_s16 = scalar_lea.vmem %s4973_s5, %s4283_s4  ;;  %s4980_s5 = scalar_lea.vmem %s4979_s15, %s4283_s4 }
  0x70   : > { %v3487_v62 = vld [vmem:[%s4974_s16] ss:$0 sm:$0xff]  ;;  %s4981_s16 = sld [smem:[#allocation39_spill]] }
  0x72   : > { %s4978_s2 = scalar_lea.vmem %s4977_s21, %s4286_s11 }
  0xf5   : > { %v1317_v3 = vpop.xlane.xlu0 %1316 }
  0xf6   : > { %v1319_v4 = vmul.f32 0.03125, %v1317_v3 }
  0xf8   : > { %v1320_v5 = vsub.f32 %v4423_v1, %v1319_v4 }
  0xfa   : > { %v1321_v6 = vmul.f32 %v1320_v5, %v1320_v5 }
  0xfc   : > { %v1322_v7 = vsel %vm1314_vm1, %v1321_v6, 0.0 }
  0xfd   : > { %1323 = vadd.xlane.f32.xlu0 %v1322_v7 }
 0x18a   : > { %v1324_v8 = vpop.xlane.xlu0 %1323 }
 0x18b   : > { %v1325_v9 = vmul.f32 0.03125, %v1324_v8 }
 0x18d   : > { %v1326_v11 = vadd.f32 1e-05, %v1325_v9 }
 0x18f   : > { %3908 = vrsqrt.f32 %v1326_v11 }
 0x199   : > { %v3909_v17 = vpop.eup %3908 }
 0x19a   : > { %v1328_v18 = vmul.f32 %v3909_v17, %v1320_v5 }
 0x19c   : > { %v1333_v20 = vmul.f32 %v1332_v16, %v1328_v18 }
 0x19e   : > { %v1338_v21 = vadd.f32 %v1337_v19, %v1333_v20 }
 0x1a0   : > { %1340 = vrot.lane.b32.xlu1 %v1338_v21, %s4046_s0  ;;  %v1346_v40 = vmul.f32 %v1338_v21, %v4471_v35  ;;  %v1493_v46 = vpack.c.bf16 %v1338_v21, %v1338_v21 }
 0x212   : > { %v1341_v22 = vpop.permute.xlu1 %1340 }
 0x213   : > { %v1342_v23 = vsel %vm1339_vm2, %v1341_v22, %v1338_v21 }
 0x214   : > { %1343 = vrot.lane.b32.xlu1 %v1342_v23, %s4046_s0 }
 0x286   : > { %v1344_v29 = vpop.permute.xlu1 %1343 }
 0x287   : > { %v1345_v30 = vsel %vm1339_vm2, %v1344_v29, %v1338_v21 }
 0x288   : > { %1353 = vrot.lane.b32.xlu1 %v1345_v30, %s4049_s3  ;;  %v1347_v31 = vsub.f32 0.0, %v1345_v30 }
 0x28a   : > { %1349 = vrot.lane.b32.xlu0 %v1347_v31, %s4050_s9 }
 0x2fa   : > { %v1354_v37 = vpop.permute.xlu1 %1353 }
 0x2fc   : > { %v1350_v38 = vpop.permute.xlu0 %1349 }
 0x2fd   : > { %v1356_v39 = vsel %vm4464_vm4, %v1350_v38, %v1354_v37 }
 0x2fe   : > { %v1357_v41 = vmul.f32 %v1356_v39, %v4476_v36 }
 0x300   : > { %v1358_v42 = vadd.f32 %v1357_v41, %v1346_v40 }
 0x302   : > { %v1363_v44 = vpack.c.bf16 %v1358_v42, %v1358_v42 }
 0x304   : > { %3627 = vmatmul.mubr.msk.bf16.vlgmr.msra.gmra.mrb[0].mxu0 %vm1314_vm1, %v1363_v44  ;;  %3635 = vmatmul.mubr.msk.bf16.vlgmr.msra.gmra.mrb[0].mxu1 %vm1314_vm1, %v1363_v44 }
 0x305   : > { %3639 = vmatpush3.bf16.msra.mxu0 %v3890_v43  ;;  %3642 = vmatprep.mubr.msk.bf16.mxu0 %vm4048_vm3, %v4047_v24 }
 0x306   : > { %3640 = vmatprep.subr.bf16.mxu0 %v4047_v24  ;;  %3648 = vmatprep.mubr.msk.bf16.mxu1 %vm4048_vm3, %v4047_v24 }
 0x309   : > { %3641 = vmatpush3.bf16.msra.mxu0 %v3891_v45 }
 0x30a   : > { %3652 = vmatprep.subr.bf16.mxu0 %v4047_v24 }
 0x30c   : > { %3643 = vmatmul.mubr.msk.bf16.vlgmr.msra.gmra.mrb[4].mxu0 %vm1314_vm1, %v1493_v46 }
 0x30d   : > { %3654 = vmatprep.mubr.msk.bf16.mxu0 %vm4048_vm3, %v4047_v24 }
 0x3d7   : > { %v1420_v49 = vpop.f32.mrb[0].mxu0  ;;  %v1483_v50 = vpop.f32.mrb[0].mxu1 }
 0x3d8   : > { %v1421_v51 = vadd.f32 %v3479_v47, %v1420_v49  ;;  %v1484_v52 = vadd.f32 %v3483_v48, %v1483_v50  ;;  %v3628_v53 = vpop.f32.mrb[1].mxu0  ;;  %v3636_v54 = vpop.f32.mrb[1].mxu1 }
 0x3d9   : > { %v1423_v55 = vpop.f32.mrb[2].mxu0  ;;  %v1486_v56 = vpop.f32.mrb[2].mxu1 }
 0x3da   : > { %v1556_v57 = vpack.c.bf16 %v1421_v51, %v1421_v51  ;;  %v1557_v58 = vpack.c.bf16 %v1484_v52, %v1484_v52  ;;  %v3629_v59 = vpop.f32.mrb[3].mxu0  ;;  %v3637_v60 = vpop.f32.mrb[3].mxu1 }
 0x3dc   : > { %1670 = vrot.lane.b32.xlu1 %v1557_v58, %s4051_s13  ;;  %1891 = vrot.lane.b32.xlu0 %v1556_v57, %s4052_s1  ;;  %v1564_v61 = vsel %vm1559_vm5, %v1557_v58, 0 }
 0x3dd   : > { %3647 = vmatpush3.bf16.xpose.msra.mxu1 %v1564_v61 }
 0x3de   : > { %3658 = vmatprep.subr.bf16.mxu1 %v4047_v24 }
 0x3df   : > { %v1550_v63 = vpop.f32.mrb[4].mxu0 }
 0x3e0   : > { %v1551_v0 = vadd.f32 %v3487_v62, %v1550_v63  ;;  %1667 = vrot.lane.b32.xlu1 %v1556_v57, %s4051_s13  ;;  %v3644_v2 = vpop.f32.mrb[5].mxu0 }
 0x3e1   : > { %v1553_v3 = vpop.f32.mrb[6].mxu0 }
 0x3e2   : > { %v4515_v4 = vpack.c.bf16 %v1551_v0, %v1551_v0  ;;  %v3645_v5 = vpop.f32.mrb[7].mxu0 }
 0x3e4   : > { %1782 = vrot.lane.b32.xlu1 %v1557_v58, %s4053_s12  ;;  %3649 = vmatmul.mubr.msk.bf16.vlgmr.msra.gmra.mrb[4].mxu1 %vm1559_vm5, %v1556_v57  ;;  %v1624_v6 = vsel %vm1622_vm6, %v4515_v4, 0 }
 0x3e5   : > { %3653 = vmatpush3.bf16.msra.mxu0 %v1624_v6  ;;  %3660 = vmatprep.mubr.msk.bf16.mxu1 %vm4048_vm3, %v4047_v24 }
 0x3e6   : > { %3664 = vmatprep.subr.bf16.mxu0 %v4047_v24 }
 0x3e8   : > { %1780 = vrot.lane.b32.xlu1 %v1556_v57, %s4053_s12 }
 0x3ec   : > { %1893 = vrot.lane.b32.xlu1 %v1557_v58, %s4052_s1 }
 0x44e   : > { %v1671_v7 = vpop.permute.xlu1 %1670  ;;  %v1892_v19 = vpop.permute.xlu0 %1891 }
 0x44f   : > { %v1676_v8 = vsel %vm1559_vm5, %v1671_v7, 0 }
 0x450   : > { %3659 = vmatpush3.bf16.xpose.msra.mxu1 %v1676_v8 }
 0x451   : > { %3670 = vmatprep.subr.bf16.mxu1 %v4047_v24 }
 0x452   : > { %v1668_v9 = vpop.permute.xlu1 %1667 }
 0x456   : > { %v1783_v10 = vpop.permute.xlu1 %1782 }
 0x457   : > { %v1788_v11 = vsel %vm1559_vm5, %v1783_v10, 0  ;;  %3661 = vmatmul.mubr.msk.bf16.vlgmr.msra.gmra.mrb[8].mxu1 %vm1559_vm5, %v1668_v9 }
 0x458   : > { %3671 = vmatpush3.bf16.xpose.msra.mxu1 %v1788_v11  ;;  %3672 = vmatprep.mubr.msk.bf16.mxu1 %vm4048_vm3, %v4047_v24 }
 0x459   : > { %3682 = vmatprep.subr.bf16.mxu1 %v4047_v24 }
 0x45a   : > { %v1781_v16 = vpop.permute.xlu1 %1780 }
 0x45e   : > { %v1894_v17 = vpop.permute.xlu1 %1893 }
 0x45f   : > { %v1899_v18 = vsel %vm1559_vm5, %v1894_v17, 0  ;;  %3673 = vmatmul.mubr.msk.bf16.vlgmr.msra.gmra.mrb[12].mxu1 %vm1559_vm5, %v1781_v16 }
 0x460   : > { %3683 = vmatpush3.bf16.xpose.msra.mxu1 %v1899_v18  ;;  %3684 = vmatprep.mubr.msk.bf16.mxu1 %vm4048_vm3, %v4047_v24 }
 0x461   : > { %3694 = vmatprep.subr.bf16.mxu1 %v4047_v24 }
 0x467   : > { %3685 = vmatmul.mubr.msk.bf16.vlgmr.msra.gmra.mrb[16].mxu1 %vm1559_vm5, %v1892_v19 }
 0x468   : > { %3698 = vmatprep.mubr.msk.bf16.mxu1 %vm4048_vm3, %v4047_v24 }
 0x4b7   : > { %v1600_v20 = vpop.f32.mrb[4].mxu1 }
 0x4b8   : > { %v1606_v21 = vmul.f32 0.35355338, %v1600_v20  ;;  %v3650_v22 = vpop.f32.mrb[5].mxu1 }
 0x4b9   : > { %v1603_v23 = vpop.f32.mrb[6].mxu1 }
 0x4ba   : > { %v3651_v25 = vpop.f32.mrb[7].mxu1  ;;  %v1607_v26 = vsel %vm1559_vm5, %v1606_v21, -inf }
 0x4bb   : > { %1608 = vmax.xlane.f32.xlu1 %v1607_v26 }
 0x52a   : > { %v1712_v27 = vpop.f32.mrb[8].mxu1 }
 0x52b   : > { %v1718_v28 = vmul.f32 0.35355338, %v1712_v27  ;;  %v3662_v29 = vpop.f32.mrb[9].mxu1 }
 0x52c   : > { %v1715_v30 = vpop.f32.mrb[10].mxu1 }
 0x52d   : > { %v3663_v31 = vpop.f32.mrb[11].mxu1  ;;  %v1719_v32 = vsel %vm1559_vm5, %v1718_v28, -inf }
 0x52e   : > { %1720 = vmax.xlane.f32.xlu0 %v1719_v32 }
 0x532   : > { %v1824_v33 = vpop.f32.mrb[12].mxu1 }
 0x533   : > { %v1830_v37 = vmul.f32 0.35355338, %v1824_v33  ;;  %v3674_v38 = vpop.f32.mrb[13].mxu1 }
 0x534   : > { %v1827_v39 = vpop.f32.mrb[14].mxu1 }
 0x535   : > { %v3675_v40 = vpop.f32.mrb[15].mxu1  ;;  %v1831_v41 = vsel %vm1559_vm5, %v1830_v37, -inf  ;;  %v3892_v39 = vld [vmem:[%s4343_s23] sm:$0xff]  }
 0x536   : > { %1832 = vmax.xlane.f32.xlu0 %v1831_v41  ;;  %3695 = vmatpush3.bf16.msra.mxu1 %v3892_v39 }
 0x537   : > { %3696 = vmatprep.subr.bf16.mxu1 %v4047_v24 }
 0x53a   : > { %v1935_v42 = vpop.f32.mrb[16].mxu1 }
 0x53b   : > { %v1941_v43 = vmul.f32 0.35355338, %v1935_v42  ;;  %v3686_v44 = vpop.f32.mrb[17].mxu1 }
 0x53c   : > { %v1938_v45 = vpop.f32.mrb[18].mxu1 }
 0x53d   : > { %v3687_v46 = vpop.f32.mrb[19].mxu1  ;;  %v1942_v47 = vsel %vm1559_vm5, %v1941_v43, -inf }
 0x53e   : > { %1943 = vmax.xlane.f32.xlu1 %v1942_v47 }
 0x548   : > { %v1609_v48 = vpop.xlane.xlu1 %1608 }
 0x549   : > { %v1610_v49 = vsub.f32 %v1606_v21, %v1609_v48  ;;  %v3893_v48 = vld [vmem:[%s4343_s23 + $0x8] sm:$0xff]   ;;  %s4982_s23 = scalar_lea.vmem %s4981_s16, %s4283_s4 }
 0x54a   : > { %3697 = vmatpush3.bf16.msra.mxu1 %v3893_v48 }
 0x54b   : > { %v1611_v50 = vmul.f32 1.442695, %v1610_v49  ;;  %3710 = vmatprep.subr.bf16.mxu1 %v4047_v24 }
 0x54d   : > { %3910 = vpow2.f32 %v1611_v50 }
 0x557   : > { %v3911_v51 = vpop.eup %3910 }
 0x558   : > { %v1613_v52 = vsel %vm1559_vm5, %v3911_v51, 0.0 }
 0x559   : > { %1614 = vadd.xlane.f32.xlu0 %v1613_v52 }
 0x5bb   : > { %v1721_v53 = vpop.xlane.xlu0 %1720 }
 0x5bc   : > { %v1722_v54 = vsub.f32 %v1718_v28, %v1721_v53 }
 0x5be   : > { %v1723_v55 = vmul.f32 1.442695, %v1722_v54 }
 0x5c0   : > { %3912 = vpow2.f32 %v1723_v55 }
 0x5c3   : > { %v1833_v56 = vpop.xlane.xlu0 %1832 }
 0x5c4   : > { %v1834_v57 = vsub.f32 %v1830_v37, %v1833_v56 }
 0x5c6   : > { %v1835_v58 = vmul.f32 1.442695, %v1834_v57 }
 0x5c8   : > { %3914 = vpow2.f32 %v1835_v58 }
 0x5ca   : > { %v3913_v59 = vpop.eup %3912 }
 0x5cb   : > { %v1725_v60 = vsel %vm1559_vm5, %v3913_v59, 0.0  ;;  %v1944_v0 = vpop.xlane.xlu1 %1943 }
 0x5cc   : > { %1726 = vadd.xlane.f32.xlu1 %v1725_v60  ;;  %v1945_v2 = vsub.f32 %v1941_v43, %v1944_v0  ;;  %v2086_v60 = vld [vmem:[%s4410_s18] sm:$0x1] }
 0x5ce   : > { %v1946_v3 = vmul.f32 1.442695, %v1945_v2 }
 0x5d2   : > { %v3915_v61 = vpop.eup %3914 }
 0x5d3   : > { %v1837_v62 = vsel %vm1559_vm5, %v3915_v61, 0.0 }
 0x5d4   : > { %1838 = vadd.xlane.f32.xlu0 %v1837_v62  ;;  %v3499_v62 = vld [vmem:[%s4975_s24] ss:$0 sm:$0xff]  ;;  %s4997_s24 = sld [smem:[#allocation51_spill]] }
 0x5dd   : > { %1843 = vrot.lane.b32.xlu1 %v4515_v4, %s4053_s12 }
 0x5e6   : > { %v1615_v63 = vpop.xlane.xlu0 %1614 }
 0x5e7   : > { %3916 = vrcp.f32 %v1615_v63 }
 0x5e8   : > { %3918 = vpow2.f32 %v1946_v3 }
 0x5ea   : > { %1732 = vrot.lane.b32.xlu0 %v4515_v4, %s4051_s13 }
 0x5f1   : > { %v3917_v5 = vpop.eup %3916 }
 0x5f2   : > { %v1617_v6 = vmul.f32 %v3917_v5, %v3911_v51  ;;  %v3919_v8 = vpop.eup %3918  ;;  %v3503_v5 = vld [vmem:[%s4410_s18 + $0x1] ss:$0 sm:$0xff] }
 0x5f3   : > { %v1948_v9 = vsel %vm1559_vm5, %v3919_v8, 0.0 }
 0x5f4   : > { %v1618_v7 = vpack.c.bf16 %v1617_v6, %v1617_v6 }
 0x5f6   : > { %3655 = vmatmul.mubr.msk.bf16.vlgmr.msra.gmra.mrb[8].mxu0 %vm1559_vm5, %v1618_v7 }
 0x5f7   : > { %3666 = vmatprep.mubr.msk.bf16.mxu0 %vm4048_vm3, %v4047_v24 }
 0x601   : > { %1949 = vadd.xlane.f32.xlu1 %v1948_v9 }
 0x612   : > { %1954 = vrot.lane.b32.xlu1 %v4515_v4, %s4052_s1 }
 0x659   : > { %v1727_v10 = vpop.xlane.xlu1 %1726 }
 0x65a   : > { %3920 = vrcp.f32 %v1727_v10 }
 0x65d   : > { %v1844_v20 = vpop.permute.xlu1 %1843 }
 0x65e   : > { %v1849_v22 = vsel %vm1622_vm6, %v1844_v20, 0 }
 0x661   : > { %v1839_v11 = vpop.xlane.xlu0 %1838 }
 0x662   : > { %3922 = vrcp.f32 %v1839_v11 }
 0x664   : > { %v3921_v16 = vpop.eup %3920 }
 0x665   : > { %v1729_v17 = vmul.f32 %v3921_v16, %v3913_v59  ;;  %v1733_v18 = vpop.permute.xlu0 %1732 }
 0x666   : > { %v1738_v19 = vsel %vm1622_vm6, %v1733_v18, 0 }
 0x667   : > { %3665 = vmatpush3.bf16.msra.mxu0 %v1738_v19  ;;  %v1730_v21 = vpack.c.bf16 %v1729_v17, %v1729_v17 }
 0x668   : > { %3676 = vmatprep.subr.bf16.mxu0 %v4047_v24 }
 0x66a   : > { %3667 = vmatmul.mubr.msk.bf16.vlgmr.msra.gmra.mrb[12].mxu0 %vm1559_vm5, %v1730_v21 }
 0x66b   : > { %3677 = vmatpush3.bf16.msra.mxu0 %v1849_v22  ;;  %3678 = vmatprep.mubr.msk.bf16.mxu0 %vm4048_vm3, %v4047_v24 }
 0x66c   : > { %v3923_v4 = vpop.eup %3922  ;;  %3688 = vmatprep.subr.bf16.mxu0 %v4047_v24 }
 0x66d   : > { %v1841_v23 = vmul.f32 %v3923_v4, %v3915_v61  ;;  %v2088_v61 = vadd.f32 1.0, %v2086_v60 }
 0x66f   : > { %v1842_v25 = vpack.c.bf16 %v1841_v23, %v1841_v23  ;;  %v2092_v63 = vrot.slane %v2088_v61, %v4432_v13 }
 0x672   : > { %3679 = vmatmul.mubr.msk.bf16.vlgmr.msra.gmra.mrb[16].mxu0 %vm1559_vm5, %v1842_v25 }
 0x673   : > { %3690 = vmatprep.mubr.msk.bf16.mxu0 %vm4048_vm3, %v4047_v24 }
 0x68e   : > { %v1950_v26 = vpop.xlane.xlu1 %1949 }
 0x68f   : > { %3924 = vrcp.f32 %v1950_v26 }
 0x692   : > { %v1955_v27 = vpop.permute.xlu1 %1954 }
 0x693   : > { %v1960_v28 = vsel %vm1622_vm6, %v1955_v27, 0 }
 0x694   : > { %3689 = vmatpush3.bf16.msra.mxu0 %v1960_v28 }
 0x695   : > { %3702 = vmatprep.subr.bf16.mxu0 %v4047_v24 }
 0x699   : > { %v3925_v29 = vpop.eup %3924 }
 0x69a   : > { %v1952_v30 = vmul.f32 %v3925_v29, %v3919_v8 }
 0x69c   : > { %v1953_v31 = vpack.c.bf16 %v1952_v30, %v1952_v30  ;;  %v3894_v30 = vld [vmem:[%s4361_s27] sm:$0xff]  }
 0x69e   : > { %3691 = vmatmul.mubr.msk.bf16.vlgmr.msra.gmra.mrb[20].mxu0 %vm1559_vm5, %v1953_v31  ;;  %v3895_v31 = vld [vmem:[%s4361_s27 + $0x8] sm:$0xff]  }
 0x69f   : > { %3706 = vmatprep.mubr.msk.bf16.mxu0 %vm4048_vm3, %v4047_v24 }
 0x6c9   : > { %v1660_v32 = vpop.f32.mrb[8].mxu0 }
 0x6ca   : > { %v3656_v33 = vpop.f32.mrb[9].mxu0 }
 0x6cb   : > { %v1663_v37 = vpop.f32.mrb[10].mxu0 }
 0x6cc   : > { %v3657_v38 = vpop.f32.mrb[11].mxu0  ;;  %v3896_v37 = vld [vmem:[%s4976_s26] sm:$0xff]  }
 0x6cd   : > { %3703 = vmatpush3.bf16.msra.mxu0 %v3896_v37  ;;  %v3897_v38 = vld [vmem:[%s4976_s26 + $0x8] sm:$0xff]  }
 0x6ce   : > { %3704 = vmatprep.subr.bf16.mxu0 %v4047_v24 }
 0x6d1   : > { %3705 = vmatpush3.bf16.msra.mxu0 %v3897_v38 }
 0x6d2   : > { %3718 = vmatprep.subr.bf16.mxu0 %v4047_v24 }
 0x73d   : > { %v1774_v40 = vpop.f32.mrb[12].mxu0 }
 0x73e   : > { %2003 = vrot.lane.b32.xlu0 %v1774_v40, %s4054_s10  ;;  %v3668_v41 = vpop.f32.mrb[13].mxu0 }
 0x73f   : > { %v1777_v42 = vpop.f32.mrb[14].mxu0 }
 0x740   : > { %v3669_v43 = vpop.f32.mrb[15].mxu0  ;;  %v3508_v42 = vld [vmem:[%s4980_s5] ss:$0 sm:$0xff] }
 0x745   : > { %v1885_v44 = vpop.f32.mrb[16].mxu0 }
 0x746   : > { %2007 = vrot.lane.b32.xlu1 %v1885_v44, %s4055_s8  ;;  %v3680_v45 = vpop.f32.mrb[17].mxu0 }
 0x747   : > { %v1888_v46 = vpop.f32.mrb[18].mxu0 }
 0x748   : > { %v3681_v47 = vpop.f32.mrb[19].mxu0 }
 0x771   : > { %v1996_v49 = vpop.f32.mrb[20].mxu0 }
 0x772   : > { %2011 = vrot.lane.b32.xlu0 %v1996_v49, %s4056_s25  ;;  %v3692_v50 = vpop.f32.mrb[21].mxu0 }
 0x773   : > { %v1999_v51 = vpop.f32.mrb[22].mxu0 }
 0x774   : > { %v3693_v52 = vpop.f32.mrb[23].mxu0 }
 0x7b0   : > { %v2004_v53 = vpop.permute.xlu0 %2003 }
 0x7b1   : > { %v2014_v55 = vsel %vm1559_vm5, %v1660_v32, %v2004_v53  ;;  %v1305_v32 = vld [vmem:[%s4978_s2] sm:$0xff]  ;;  %s4986_s2 = sld [smem:[#allocation43_spill]] }
 0x7b7   : > { %s4987_s27 = scalar_lea.vmem %s4986_s2, %s4283_s4 }
 0x7b8   : > { %v2008_v54 = vpop.permute.xlu1 %2007 }
 0x7b9   : > { %v2016_v56 = vsel %vm2015_vm7, %v2014_v55, %v2008_v54 }
 0x7e4   : > { %v2012_v57 = vpop.permute.xlu0 %2011 }
 0x7e5   : > { %v2018_v58 = vsel %vm2017_vm8, %v2016_v56, %v2012_v57  ;;  %v3504_v57 = vld [vmem:[%s4982_s23] ss:$0 sm:$0xff]  ;;  %s3097_s23 = sshll.u32 %s4413_s19, 4  ;;  %s4780_s23 = int_to_ptr.vmem [resolvable:$true] %s3097_s23 }
 0x7e6   : > { %v2023_v59 = vpack.c.bf16 %v2018_v58, %v2018_v58  ;;  %s3950_s20 = scalar_lea.vmem %s4780_s23, 128 }
 0x7e7   : > { %p3951_p1 = scmp.ne.s32.totalorder %s4780_s23, %s3950_s20 }
 0x7e8   : > { %3699 = vmatmul.mubr.msk.bf16.vlgmr.msra.gmra.mrb[20].mxu1 %vm1314_vm1, %v2023_v59 }
 0x7e9   : > { %3714 = vmatprep.mubr.msk.bf16.mxu1 %vm4048_vm3, %v4047_v24  ;;  %3711 = vmatpush3.bf16.msra.mxu1 %v3894_v30  ;;  %p3952_p2 = pnand %p3951_p1, %p4252_p3 }
 0x7ea   : > { %3712 = vmatprep.subr.bf16.mxu1 %v4047_v24 }
 0x7eb   : > { %p3953_p4 = pneg %p3952_p2 }
 0x7ed   : > { %3713 = vmatpush3.bf16.msra.mxu1 %v3895_v31 }
 0x7ee   : > { %3726 = vmatprep.subr.bf16.mxu1 %v4047_v24 }
 0x8bb   : > { %v2080_v0 = vpop.f32.mrb[20].mxu1 }
 0x8bc   : > { %v2081_v2 = vadd.f32 %v3499_v62, %v2080_v0  ;;  %v3700_v3 = vpop.f32.mrb[21].mxu1  ;;  %v3899_v0 = vld [vmem:[%s4983_s7 + $0x8] sm:$0xff]  }
 0x8bd   : > { %v2083_v6 = vpop.f32.mrb[22].mxu1 }
 0x8be   : > { %v2093_v7 = vmul.f32 %v2092_v63, %v2081_v2  ;;  %v3701_v8 = vpop.f32.mrb[23].mxu1  ;;  %v3898_v63 = vld [vmem:[%s4983_s7] sm:$0xff]  }
 0x8bf   : > { %v1304_v2 = vld [vmem:[%s4985_s28] sm:$0xff]  ;;  %s4057_s28 = smov [#allocation2]  }
 0x8c0   : > { %v2098_v9 = vadd.f32 %v3503_v5, %v2093_v7  ;;  %v2280_v3 = vpack.c.bf16 %v1304_v2, %v1304_v2  ;;  %s3954_s11 = sshll.u32 %s4057_s28, 4  ;;  %s3955_s11 = int_to_ptr.vmem [resolvable:$false] %s3954_s11 }
 0x8c1   : > { %s3956_s21 = scalar_lea.vmem %s3955_s11, 256  ;;  %p3957_p5 = scmp.lt.s32.totalorder %s4780_s23, %s3955_s11 }
 0x8c2   : > { %v4595_v10 = vadd.f32 %v2098_v9, %v4423_v1  ;;  %v2115_v1 = vsub.s32 1, %v4429_v12  ;;  %p3958_p6 = scmp.lt.s32.totalorder %s3956_s21, %s3950_s20 }
 0x8c4   : > { %v2100_v11 = vsel %vm1314_vm1, %v4595_v10, 0.0  ;;  %v2116_v23 = vrot.slane %v4435_v14, %v2115_v1  ;;  %v2121_v27 = vrot.slane %v4438_v15, %v2115_v1  ;;  %v2213_v14 = vpack.c.bf16 %v1305_v32, %v1305_v32  ;;  %p3959_p7 = por %p3958_p6, %p3957_p5 }
 0x8c5   : > { %2101 = vadd.xlane.f32.xlu1 %v2100_v11 }
 0x8c6   : > { %3715 = vmatmul.mubr.msk.bf16.vlgmr.msra.gmra.mrb[24].mxu1 %vm1314_vm1, %v2213_v14  ;;  %p3960_p8 = pnand %p3959_p7, %p3953_p4 }
 0x8c7   : > { %3728 = vmatprep.mubr.msk.bf16.mxu1 %vm4048_vm3, %v4047_v24 }
 0x952   : > { %v2102_v16 = vpop.xlane.xlu1 %2101 }
 0x953   : > { %v2103_v17 = vmul.f32 0.03125, %v2102_v16 }
 0x955   : > { %v2104_v18 = vsub.f32 %v4595_v10, %v2103_v17 }
 0x957   : > { %v2105_v19 = vmul.f32 %v2104_v18, %v2104_v18 }
 0x959   : > { %v2106_v20 = vsel %vm1314_vm1, %v2105_v19, 0.0 }
 0x95a   : > { %2107 = vadd.xlane.f32.xlu0 %v2106_v20 }
 0x999   : > { %v2270_v43 = vpop.f32.mrb[24].mxu1 }
 0x99a   : > { %v2271_v44 = vadd.f32 %v3508_v42, %v2270_v43  ;;  %v3716_v45 = vpop.f32.mrb[25].mxu1 }
 0x99b   : > { %v2273_v46 = vpop.f32.mrb[26].mxu1 }
 0x99c   : > { %v2344_v47 = vpack.c.bf16 %v2271_v44, %v2271_v44  ;;  %v3717_v48 = vpop.f32.mrb[27].mxu1  ;;  %v3512_v44 = vld [vmem:[%s4987_s27] ss:$0 sm:$0xff] }
 0x99e   : > { %v2350_v49 = vsel %vm1559_vm5, %v2344_v47, 0 }
 0x99f   : > { %3727 = vmatpush3.bf16.xpose.msra.mxu1 %v2350_v49 }
 0x9a0   : > { %3738 = vmatprep.subr.bf16.mxu1 %v4047_v24 }
 0x9e7   : > { %v2108_v21 = vpop.xlane.xlu0 %2107 }
 0x9e8   : > { %v2109_v22 = vmul.f32 0.03125, %v2108_v21 }
 0x9ea   : > { %v2110_v4 = vadd.f32 1e-05, %v2109_v22 }
 0x9ec   : > { %3926 = vrsqrt.f32 %v2110_v4 }
 0x9f6   : > { %v3927_v25 = vpop.eup %3926 }
 0x9f7   : > { %v2112_v26 = vmul.f32 %v3927_v25, %v2104_v18 }
 0x9f9   : > { %v2117_v28 = vmul.f32 %v2116_v23, %v2112_v26 }
 0x9fb   : > { %v2122_v29 = vadd.f32 %v2121_v27, %v2117_v28 }
 0x9fd   : > { %2123 = vrot.lane.b32.xlu0 %v2122_v29, %s4046_s0  ;;  %v2129_v53 = vmul.f32 %v2122_v29, %v4471_v35 }
 0xa6f   : > { %v2124_v15 = vpop.permute.xlu0 %2123 }
 0xa70   : > { %v2125_v33 = vsel %vm1339_vm2, %v2124_v15, %v2122_v29 }
 0xa71   : > { %2126 = vrot.lane.b32.xlu1 %v2125_v33, %s4046_s0 }
 0xae3   : > { %v2127_v39 = vpop.permute.xlu1 %2126 }
 0xae4   : > { %v2128_v40 = vsel %vm1339_vm2, %v2127_v39, %v2122_v29 }
 0xae5   : > { %2136 = vrot.lane.b32.xlu0 %v2128_v40, %s4049_s3  ;;  %v2130_v41 = vsub.f32 0.0, %v2128_v40  ;;  %s4995_s3 = sld [smem:[#allocation6_spill]] }
 0xae7   : > { %2132 = vrot.lane.b32.xlu1 %v2130_v41, %s4050_s9 }
 0xaeb   : > { %2455 = vrot.lane.b32.xlu1 %v2344_v47, %s4051_s13 }
 0xaef   : > { %2567 = vrot.lane.b32.xlu1 %v2344_v47, %s4053_s12 }
 0xaf3   : > { %2678 = vrot.lane.b32.xlu1 %v2344_v47, %s4052_s1 }
 0xb57   : > { %v2137_v50 = vpop.permute.xlu0 %2136 }
 0xb59   : > { %v2133_v51 = vpop.permute.xlu1 %2132 }
 0xb5a   : > { %v2139_v52 = vsel %vm4464_vm4, %v2133_v51, %v2137_v50 }
 0xb5b   : > { %v2140_v54 = vmul.f32 %v2139_v52, %v4476_v36 }
 0xb5d   : > { %v2141_v55 = vadd.f32 %v2140_v54, %v2129_v53  ;;  %v2456_v36 = vpop.permute.xlu1 %2455 }
 0xb5e   : > { %v2461_v62 = vsel %vm1559_vm5, %v2456_v36, 0 }
 0xb5f   : > { %v2146_v56 = vpack.c.bf16 %v2141_v55, %v2141_v55 }
 0xb61   : > { %3707 = vmatmul.mubr.msk.bf16.vlgmr.msra.gmra.mrb[24].mxu0 %vm1314_vm1, %v2146_v56  ;;  %v2568_v5 = vpop.permute.xlu1 %2567 }
 0xb62   : > { %3722 = vmatprep.mubr.msk.bf16.mxu0 %vm4048_vm3, %v4047_v24  ;;  %3719 = vmatpush3.bf16.msra.mxu0 %v3898_v63  ;;  %v2573_v7 = vsel %vm1559_vm5, %v2568_v5, 0 }
 0xb63   : > { %3720 = vmatprep.subr.bf16.mxu0 %v4047_v24 }
 0xb65   : > { %v2679_v8 = vpop.permute.xlu1 %2678 }
 0xb66   : > { %3721 = vmatpush3.bf16.msra.mxu0 %v3899_v0  ;;  %v2684_v11 = vsel %vm1559_vm5, %v2679_v8, 0 }
 0xb67   : > { %3732 = vmatprep.subr.bf16.mxu0 %v4047_v24 }
 0xb69   : > { %3723 = vmatmul.mubr.msk.bf16.vlgmr.msra.gmra.mrb[28].mxu0 %vm1314_vm1, %v2280_v3 }
 0xb6a   : > { %3734 = vmatprep.mubr.msk.bf16.mxu0 %vm4048_vm3, %v4047_v24 }
 0xc34   : > { %v2203_v58 = vpop.f32.mrb[24].mxu0 }
 0xc35   : > { %v2204_v34 = vadd.f32 %v3504_v57, %v2203_v58  ;;  %v3708_v59 = vpop.f32.mrb[25].mxu0 }
 0xc36   : > { %v2206_v35 = vpop.f32.mrb[26].mxu0 }
 0xc37   : > { %v2343_v60 = vpack.c.bf16 %v2204_v34, %v2204_v34  ;;  %v3709_v61 = vpop.f32.mrb[27].mxu0 }
 0xc39   : > { %2452 = vrot.lane.b32.xlu0 %v2343_v60, %s4051_s13  ;;  %3729 = vmatmul.mubr.msk.bf16.vlgmr.msra.gmra.mrb[28].mxu1 %vm1559_vm5, %v2343_v60 }
 0xc3a   : > { %3739 = vmatpush3.bf16.xpose.msra.mxu1 %v2461_v62  ;;  %3740 = vmatprep.mubr.msk.bf16.mxu1 %vm4048_vm3, %v4047_v24 }
 0xc3b   : > { %3750 = vmatprep.subr.bf16.mxu1 %v4047_v24 }
 0xc3c   : > { %v2337_v45 = vpop.f32.mrb[28].mxu0 }
 0xc3d   : > { %2565 = vrot.lane.b32.xlu0 %v2343_v60, %s4053_s12  ;;  %v2338_v46 = vadd.f32 %v3512_v44, %v2337_v45  ;;  %v3724_v47 = vpop.f32.mrb[29].mxu0 }
 0xc3e   : > { %v2340_v48 = vpop.f32.mrb[30].mxu0 }
 0xc3f   : > { %v3725_v50 = vpop.f32.mrb[31].mxu0  ;;  %v2345_v52 = vpack.c.bf16 %v2338_v46, %v2338_v46 }
 0xc41   : > { %2676 = vrot.lane.b32.xlu0 %v2343_v60, %s4052_s1  ;;  %v2409_v53 = vsel %vm1622_vm6, %v2345_v52, 0 }
 0xc42   : > { %3733 = vmatpush3.bf16.msra.mxu0 %v2409_v53 }
 0xc43   : > { %3744 = vmatprep.subr.bf16.mxu0 %v4047_v24 }
 0xcab   : > { %v2453_v6 = vpop.permute.xlu0 %2452 }
 0xcac   : > { %3741 = vmatmul.mubr.msk.bf16.vlgmr.msra.gmra.mrb[32].mxu1 %vm1559_vm5, %v2453_v6 }
 0xcad   : > { %3751 = vmatpush3.bf16.xpose.msra.mxu1 %v2573_v7  ;;  %3752 = vmatprep.mubr.msk.bf16.mxu1 %vm4048_vm3, %v4047_v24 }
 0xcae   : > { %3762 = vmatprep.subr.bf16.mxu1 %v4047_v24 }
 0xcaf   : > { %v2566_v9 = vpop.permute.xlu0 %2565 }
 0xcb3   : > { %v2677_v16 = vpop.permute.xlu0 %2676 }
 0xcb4   : > { %3753 = vmatmul.mubr.msk.bf16.vlgmr.msra.gmra.mrb[36].mxu1 %vm1559_vm5, %v2566_v9 }
 0xcb5   : > { %3763 = vmatpush3.bf16.xpose.msra.mxu1 %v2684_v11  ;;  %3764 = vmatprep.mubr.msk.bf16.mxu1 %vm4048_vm3, %v4047_v24 }
 0xcb6   : > { %3774 = vmatprep.subr.bf16.mxu1 %v4047_v24 }
 0xcbc   : > { %3765 = vmatmul.mubr.msk.bf16.vlgmr.msra.gmra.mrb[40].mxu1 %vm1559_vm5, %v2677_v16 }
 0xcbd   : > { %3778 = vmatprep.mubr.msk.bf16.mxu1 %vm4048_vm3, %v4047_v24 }
 0xd0c   : > { %v2386_v17 = vpop.f32.mrb[28].mxu1 }
 0xd0d   : > { %v2392_v18 = vmul.f32 0.35355338, %v2386_v17  ;;  %v3730_v19 = vpop.f32.mrb[29].mxu1 }
 0xd0e   : > { %v2389_v20 = vpop.f32.mrb[30].mxu1 }
 0xd0f   : > { %v3731_v21 = vpop.f32.mrb[31].mxu1  ;;  %v2393_v22 = vsel %vm1559_vm5, %v2392_v18, -inf }
 0xd10   : > { %2394 = vmax.xlane.f32.xlu1 %v2393_v22 }
 0xd7f   : > { %v2497_v4 = vpop.f32.mrb[32].mxu1 }
 0xd80   : > { %v2503_v1 = vmul.f32 0.35355338, %v2497_v4  ;;  %v3742_v23 = vpop.f32.mrb[33].mxu1 }
 0xd81   : > { %v2500_v25 = vpop.f32.mrb[34].mxu1 }
 0xd82   : > { %v3743_v26 = vpop.f32.mrb[35].mxu1  ;;  %v2504_v27 = vsel %vm1559_vm5, %v2503_v1, -inf }
 0xd83   : > { %2505 = vmax.xlane.f32.xlu0 %v2504_v27 }
 0xd87   : > { %v2609_v28 = vpop.f32.mrb[36].mxu1 }
 0xd88   : > { %v2615_v29 = vmul.f32 0.35355338, %v2609_v28  ;;  %v3754_v30 = vpop.f32.mrb[37].mxu1 }
 0xd89   : > { %v2612_v31 = vpop.f32.mrb[38].mxu1 }
 0xd8a   : > { %v3755_v32 = vpop.f32.mrb[39].mxu1  ;;  %v2616_v14 = vsel %vm1559_vm5, %v2615_v29, -inf }
 0xd8b   : > { %2617 = vmax.xlane.f32.xlu0 %v2616_v14 }
 0xd8f   : > { %v2720_v15 = vpop.f32.mrb[40].mxu1 }
 0xd90   : > { %v2726_v33 = vmul.f32 0.35355338, %v2720_v15  ;;  %v3766_v37 = vpop.f32.mrb[41].mxu1 }
 0xd91   : > { %v2723_v38 = vpop.f32.mrb[42].mxu1 }
 0xd92   : > { %v3767_v39 = vpop.f32.mrb[43].mxu1  ;;  %v2727_v40 = vsel %vm1559_vm5, %v2726_v33, -inf }
 0xd93   : > { %2728 = vmax.xlane.f32.xlu1 %v2727_v40 }
 0xd9d   : > { %v2395_v41 = vpop.xlane.xlu1 %2394 }
 0xd9e   : > { %v2396_v42 = vsub.f32 %v2392_v18, %v2395_v41 }
 0xda0   : > { %v2397_v43 = vmul.f32 1.442695, %v2396_v42 }
 0xda2   : > { %3928 = vpow2.f32 %v2397_v43 }
 0xdac   : > { %v3929_v49 = vpop.eup %3928 }
 0xdad   : > { %v2399_v51 = vsel %vm1559_vm5, %v3929_v49, 0.0 }
 0xdae   : > { %2400 = vadd.xlane.f32.xlu0 %v2399_v51 }
 0xe10   : > { %v2506_v54 = vpop.xlane.xlu0 %2505 }
 0xe11   : > { %v2507_v55 = vsub.f32 %v2503_v1, %v2506_v54 }
 0xe13   : > { %v2508_v56 = vmul.f32 1.442695, %v2507_v55 }
 0xe15   : > { %3930 = vpow2.f32 %v2508_v56  ;;  %v3528_v56 = vld [vmem:[%s4410_s18 + $0x2] sm:$0x1] }
 0xe18   : > { %v2618_v57 = vpop.xlane.xlu0 %2617 }
 0xe19   : > { %v2619_v58 = vsub.f32 %v2615_v29, %v2618_v57  ;;  %v2872_v57 = vadd.f32 1.0, %v3528_v56 }
 0xe1b   : > { %v2620_v34 = vmul.f32 1.442695, %v2619_v58 }
 0xe1d   : > { %3932 = vpow2.f32 %v2620_v34  ;;  %v2876_v34 = vrot.slane %v2872_v57, %v4432_v13 }
 0xe1f   : > { %v3931_v59 = vpop.eup %3930 }
 0xe20   : > { %v2510_v35 = vsel %vm1559_vm5, %v3931_v59, 0.0  ;;  %v2729_v62 = vpop.xlane.xlu1 %2728 }
 0xe21   : > { %2511 = vadd.xlane.f32.xlu1 %v2510_v35  ;;  %v2730_v63 = vsub.f32 %v2726_v33, %v2729_v62 }
 0xe23   : > { %v2731_v0 = vmul.f32 1.442695, %v2730_v63 }
 0xe27   : > { %v3933_v36 = vpop.eup %3932 }
 0xe28   : > { %v2622_v60 = vsel %vm1559_vm5, %v3933_v36, 0.0 }
 0xe29   : > { %2623 = vadd.xlane.f32.xlu0 %v2622_v60  ;;  %v3530_v60 = vld [vmem:[%s4410_s18 + $0x3] ss:$0 sm:$0xff] }
 0xe32   : > { %2628 = vrot.lane.b32.xlu1 %v2345_v52, %s4053_s12 }
 0xe3b   : > { %v2401_v61 = vpop.xlane.xlu0 %2400 }
 0xe3c   : > { %3934 = vrcp.f32 %v2401_v61 }
 0xe3d   : > { %3936 = vpow2.f32 %v2731_v0 }
 0xe3f   : > { %2517 = vrot.lane.b32.xlu0 %v2345_v52, %s4051_s13  ;;  %s4988_s13 = sld [smem:[#allocation22_spill]] }
 0xe45   : > { %v3900_v15 = vld [vmem:[%s4988_s13] sm:$0xff]   ;;  %v3901_v44 = vld [vmem:[%s4988_s13 + $0x8] sm:$0xff]  }
 0xe46   : > { %v3935_v2 = vpop.eup %3934  ;;  %3775 = vmatpush3.bf16.msra.mxu1 %v3900_v15 }
 0xe47   : > { %v2403_v3 = vmul.f32 %v3935_v2, %v3929_v49  ;;  %v3937_v6 = vpop.eup %3936  ;;  %3776 = vmatprep.subr.bf16.mxu1 %v4047_v24 }
 0xe48   : > { %v2733_v7 = vsel %vm1559_vm5, %v3937_v6, 0.0 }
 0xe49   : > { %v2404_v5 = vpack.c.bf16 %v2403_v3, %v2403_v3 }
 0xe4a   : > { %3777 = vmatpush3.bf16.msra.mxu1 %v3901_v44 }
 0xe4b   : > { %3735 = vmatmul.mubr.msk.bf16.vlgmr.msra.gmra.mrb[32].mxu0 %vm1559_vm5, %v2404_v5  ;;  %3790 = vmatprep.subr.bf16.mxu1 %v4047_v24 }
 0xe4c   : > { %3746 = vmatprep.mubr.msk.bf16.mxu0 %vm4048_vm3, %v4047_v24 }
 0xe56   : > { %2734 = vadd.xlane.f32.xlu1 %v2733_v7 }
 0xe67   : > { %2739 = vrot.lane.b32.xlu1 %v2345_v52, %s4052_s1 }
 0xeae   : > { %v2512_v8 = vpop.xlane.xlu1 %2511 }
 0xeaf   : > { %3938 = vrcp.f32 %v2512_v8 }
 0xeb2   : > { %v2629_v19 = vpop.permute.xlu1 %2628 }
 0xeb3   : > { %v2634_v21 = vsel %vm1622_vm6, %v2629_v19, 0  ;;  %v2899_v19 = vsub.s32 2, %v4429_v12  ;;  %v3906_v12 = vld [vmem:[%s4398_s30 + $0x10] sm:$0xff]  }
 0xeb6   : > { %v2624_v9 = vpop.xlane.xlu0 %2623 }
 0xeb7   : > { %3940 = vrcp.f32 %v2624_v9 }
 0xeb9   : > { %v3939_v11 = vpop.eup %3938 }
 0xeba   : > { %v2514_v16 = vmul.f32 %v3939_v11, %v3931_v59  ;;  %v2518_v17 = vpop.permute.xlu0 %2517 }
 0xebb   : > { %v2523_v18 = vsel %vm1622_vm6, %v2518_v17, 0 }
 0xebc   : > { %3745 = vmatpush3.bf16.msra.mxu0 %v2523_v18  ;;  %v2515_v20 = vpack.c.bf16 %v2514_v16, %v2514_v16 }
 0xebd   : > { %3756 = vmatprep.subr.bf16.mxu0 %v4047_v24 }
 0xebf   : > { %3747 = vmatmul.mubr.msk.bf16.vlgmr.msra.gmra.mrb[36].mxu0 %vm1559_vm5, %v2515_v20  ;;  %v3948_v20 = vld [vmem:[%s4305_s22] sm:$0x7] }
 0xec0   : > { %3757 = vmatpush3.bf16.msra.mxu0 %v2634_v21  ;;  %3758 = vmatprep.mubr.msk.bf16.mxu0 %vm4048_vm3, %v4047_v24  ;;  %v2900_v21 = vrot.slane %v3948_v20, %v2899_v19 }
 0xec1   : > { %v3941_v22 = vpop.eup %3940  ;;  %3768 = vmatprep.subr.bf16.mxu0 %v4047_v24 }
 0xec2   : > { %v2626_v4 = vmul.f32 %v3941_v22, %v3933_v36 }
 0xec4   : > { %v2627_v1 = vpack.c.bf16 %v2626_v4, %v2626_v4 }
 0xec7   : > { %3759 = vmatmul.mubr.msk.bf16.vlgmr.msra.gmra.mrb[40].mxu0 %vm1559_vm5, %v2627_v1  ;;  %v3949_v1 = vld [vmem:[%s4963_s6] sm:$0x7] }
 0xec8   : > { %3770 = vmatprep.mubr.msk.bf16.mxu0 %vm4048_vm3, %v4047_v24 }
 0xee3   : > { %v2735_v23 = vpop.xlane.xlu1 %2734 }
 0xee4   : > { %3942 = vrcp.f32 %v2735_v23  ;;  %v2905_v23 = vrot.slane %v3949_v1, %v2899_v19 }
 0xee7   : > { %v2740_v25 = vpop.permute.xlu1 %2739 }
 0xee8   : > { %v2745_v26 = vsel %vm1622_vm6, %v2740_v25, 0 }
 0xee9   : > { %3769 = vmatpush3.bf16.msra.mxu0 %v2745_v26 }
 0xeea   : > { %3782 = vmatprep.subr.bf16.mxu0 %v4047_v24 }
 0xeee   : > { %v3943_v27 = vpop.eup %3942 }
 0xeef   : > { %v2737_v28 = vmul.f32 %v3943_v27, %v3937_v6 }
 0xef1   : > { %v2738_v29 = vpack.c.bf16 %v2737_v28, %v2737_v28  ;;  %v3904_v28 = vld [vmem:[%s4398_s30] sm:$0xff]  }
 0xef3   : > { %3771 = vmatmul.mubr.msk.bf16.vlgmr.msra.gmra.mrb[44].mxu0 %vm1559_vm5, %v2738_v29  ;;  %v3905_v29 = vld [vmem:[%s4398_s30 + $0x8] sm:$0xff]  }
 0xef4   : > { %3786 = vmatprep.mubr.msk.bf16.mxu0 %vm4048_vm3, %v4047_v24 }
 0xf1e   : > { %v2445_v30 = vpop.f32.mrb[32].mxu0 }
 0xf1f   : > { %v3736_v31 = vpop.f32.mrb[33].mxu0 }
 0xf20   : > { %v2448_v32 = vpop.f32.mrb[34].mxu0  ;;  %v3531_v31 = vld [vmem:[%s1277_s29] ss:$0 sm:$0xff] }
 0xf21   : > { %v3737_v14 = vpop.f32.mrb[35].mxu0 }
 0xf92   : > { %v2559_v33 = vpop.f32.mrb[36].mxu0 }
 0xf93   : > { %2788 = vrot.lane.b32.xlu0 %v2559_v33, %s4054_s10  ;;  %v3748_v37 = vpop.f32.mrb[37].mxu0  ;;  %s4989_s10 = sld [smem:[#allocation45_spill]] }
 0xf94   : > { %v2562_v38 = vpop.f32.mrb[38].mxu0 }
 0xf95   : > { %v3749_v39 = vpop.f32.mrb[39].mxu0 }
 0xf9a   : > { %v2670_v40 = vpop.f32.mrb[40].mxu0 }
 0xf9b   : > { %2792 = vrot.lane.b32.xlu1 %v2670_v40, %s4055_s8  ;;  %v3760_v41 = vpop.f32.mrb[41].mxu0  ;;  %s4990_s8 = scalar_lea.vmem %s4989_s10, %s4283_s4 }
 0xf9c   : > { %v2673_v42 = vpop.f32.mrb[42].mxu0  ;;  %v3524_v58 = vld [vmem:[%s4990_s8] ss:$0 sm:$0xff] }
 0xf9d   : > { %v3761_v43 = vpop.f32.mrb[43].mxu0 }
 0xfc6   : > { %v2781_v45 = vpop.f32.mrb[44].mxu0 }
 0xfc7   : > { %2796 = vrot.lane.b32.xlu0 %v2781_v45, %s4056_s25  ;;  %v3772_v46 = vpop.f32.mrb[45].mxu0  ;;  %s4991_s25 = sld [smem:[#allocation23_spill]] }
 0xfc8   : > { %v2784_v47 = vpop.f32.mrb[46].mxu0 }
 0xfc9   : > { %v3773_v48 = vpop.f32.mrb[47].mxu0  ;;  %v3541_v47 = vld [vmem:[%s4410_s18 + $0x4] sm:$0x1] }
 0xfca   : > { %v3070_v48 = vadd.f32 1.0, %v3541_v47 }
 0xfcd   : > { %v3902_v11 = vld [vmem:[%s4991_s25] sm:$0xff]   ;;  %v3903_v16 = vld [vmem:[%s4991_s25 + $0x8] sm:$0xff]  }
 0xfce   : > { %3783 = vmatpush3.bf16.msra.mxu0 %v3902_v11 }
 0xfcf   : > { %3784 = vmatprep.subr.bf16.mxu0 %v4047_v24 }
 0xfd2   : > { %3785 = vmatpush3.bf16.msra.mxu0 %v3903_v16 }
0x1005   : > { %v2789_v49 = vpop.permute.xlu0 %2788 }
0x1006   : > { %v2799_v51 = vsel %vm1559_vm5, %v2445_v30, %v2789_v49  ;;  %v3907_v30 = vld [vmem:[%s4398_s30 + $0x18] sm:$0xff]   ;;  %s4993_s30 = sld [smem:[#allocation9_spill]]  ;;  %v3535_v49 = vld [vmem:[%s1285_s17] ss:$0 sm:$0xff] }
0x100c   : > { %s3545_s16 = sshll.u32 %s4993_s30, 7 }
0x100d   : > { %v2793_v50 = vpop.permute.xlu1 %2792  ;;  %s4778_s17 = scalar_lea.hbm %s4997_s24, %s3545_s16 }
0x100e   : > { %v2800_v52 = vsel %vm2015_vm7, %v2799_v51, %v2793_v50  ;;  %v3074_v50 = vrot.slane %v3070_v48, %v4432_v13 }
0x1039   : > { %v2797_v53 = vpop.permute.xlu0 %2796 }
0x103a   : > { %v2801_v54 = vsel %vm2017_vm8, %v2800_v52, %v2797_v53 }
0x103b   : > { %v2806_v55 = vpack.c.bf16 %v2801_v54, %v2801_v54  ;;  %v3543_v54 = vld [vmem:[%s4410_s18 + $0x5] ss:$0 sm:$0xff]  ;;  %s4998_s18 = sand.u32 1, %s4995_s3  }
0x103c   : > { %s3084_s26 = scalar_lea.sflag [#allocation3], %s4998_s18 }
0x103d   : > { %3779 = vmatmul.mubr.msk.bf16.vlgmr.msra.gmra.mrb[44].mxu1 %vm1314_vm1, %v2806_v55 }
0x103e   : > { %3798 = vmatprep.mubr.msk.bf16.mxu1 %vm4048_vm3, %v4047_v24  ;;  %3791 = vmatpush3.bf16.msra.mxu1 %v3904_v28 }
0x103f   : > { %3792 = vmatprep.subr.bf16.mxu1 %v4047_v24 }
0x1042   : > { %3793 = vmatpush3.bf16.msra.mxu1 %v3905_v29 }
0x1043   : > { %3794 = vmatprep.subr.bf16.mxu1 %v4047_v24 }
0x1046   : > { %3795 = vmatpush3.bf16.msra.mxu1 %v3906_v12 }
0x1047   : > { %3796 = vmatprep.subr.bf16.mxu1 %v4047_v24 }
0x104a   : > { %3797 = vmatpush3.bf16.msra.mxu1 %v3907_v30 }
0x1110   : > { %v2863_v59 = vpop.f32.mrb[44].mxu1 }
0x1111   : > { %v2864_v35 = vadd.f32 %v3524_v58, %v2863_v59  ;;  %v3780_v36 = vpop.f32.mrb[45].mxu1 }
0x1112   : > { %v2866_v61 = vpop.f32.mrb[46].mxu1 }
0x1113   : > { %v2877_v62 = vmul.f32 %v2876_v34, %v2864_v35  ;;  %v3781_v63 = vpop.f32.mrb[47].mxu1 }
0x1115   : > { %v2882_v0 = vadd.f32 %v3530_v60, %v2877_v62 }
0x1117   : > { %v4739_v2 = vadd.f32 %v2882_v0, %v4595_v10 }
0x1119   : > { %v2884_v3 = vsel %vm1314_vm1, %v4739_v2, 0.0 }
0x111a   : > { %2885 = vadd.xlane.f32.xlu1 %v2884_v3 }
0x11a7   : > { %v2886_v5 = vpop.xlane.xlu1 %2885 }
0x11a8   : > { %v2887_v6 = vmul.f32 0.03125, %v2886_v5 }
0x11aa   : > { %v2888_v7 = vsub.f32 %v4739_v2, %v2887_v6 }
0x11ac   : > { %v2889_v8 = vmul.f32 %v2888_v7, %v2888_v7 }
0x11ae   : > { %v2890_v9 = vsel %vm1314_vm1, %v2889_v8, 0.0 }
0x11af   : > { %2891 = vadd.xlane.f32.xlu0 %v2890_v9 }
0x123c   : > { %v2892_v10 = vpop.xlane.xlu0 %2891 }
0x123d   : > { %v2893_v17 = vmul.f32 0.03125, %v2892_v10 }
0x123f   : > { %v2894_v18 = vadd.f32 1e-05, %v2893_v17 }
0x1241   : > { %3944 = vrsqrt.f32 %v2894_v18 }
0x124b   : > { %v3945_v22 = vpop.eup %3944 }
0x124c   : > { %v2896_v4 = vmul.f32 %v3945_v22, %v2888_v7 }
0x124e   : > { %v2901_v25 = vmul.f32 %v2900_v21, %v2896_v4 }
0x1250   : > { %v2906_v26 = vadd.f32 %v2905_v23, %v2901_v25 }
0x1252   : > { %v2911_v27 = vpack.c.bf16 %v2906_v26, %v2906_v26 }
0x1254   : > { %3787 = vmatmul.mubr.msk.bf16.vlgmr.msra.gmra.mrb[48].mxu0 %vm1314_vm1, %v2911_v27 }
0x1327   : > { %v2968_v32 = vpop.f32.mrb[48].mxu0 }
0x1328   : > { %v2969_v14 = vadd.f32 %v3531_v31, %v2968_v32  ;;  %v3788_v15 = vpop.f32.mrb[49].mxu0 }
0x1329   : > { %v2971_v33 = vpop.f32.mrb[50].mxu0 }
0x132a   : > { %v2975_v37 = vmul.f32 0.044715, %v2969_v14  ;;  %v3789_v38 = vpop.f32.mrb[51].mxu0  ;;  %v2974_v43 = vmul.f32 0.5, %v2969_v14 }
0x132c   : > { %v2976_v39 = vmul.f32 %v2975_v37, %v2969_v14 }
0x132e   : > { %v2977_v40 = vmul.f32 %v2976_v39, %v2969_v14 }
0x1330   : > { %v2978_v41 = vadd.f32 %v2977_v40, %v2969_v14 }
0x1332   : > { %v2979_v42 = vmul.f32 0.7978846, %v2978_v41 }
0x1334   : > { %3946 = vtanh.f32 %v2979_v42 }
0x133e   : > { %v3947_v24 = vpop.eup %3946 }
0x133f   : > { %v2981_v44 = vadd.f32 1.0, %v3947_v24 }
0x1341   : > { %v2982_v45 = vmul.f32 %v2981_v44, %v2974_v43 }
0x1343   : > { %v2991_v46 = vpack.c.bf16 %v2982_v45, %v2982_v45 }
0x1345   : > { %3799 = vmatmul.mubr.msk.bf16.vlgmr.msra.gmra.mrb[48].mxu1 %vm3023_vm9, %v2991_v46 }
0x1418   : > { %v3061_v51 = vpop.f32.mrb[48].mxu1 }
0x1419   : > { %v3062_v52 = vadd.f32 %v3535_v49, %v3061_v51  ;;  %v3800_v53 = vpop.f32.mrb[49].mxu1 }
0x141a   : > { %v3064_v55 = vpop.f32.mrb[50].mxu1 }
0x141b   : > { %v3075_v56 = vmul.f32 %v3074_v50, %v3062_v52  ;;  %v3801_v57 = vpop.f32.mrb[51].mxu1 }
0x141d   : > { %v3080_v58 = vadd.f32 %v3543_v54, %v3075_v56 }
0x141f   : > { %v3081_v34 = vadd.f32 %v3080_v58, %v4739_v2 }
0x1421   : > { %3082 = vst.msk [vmem:[%s4413_s19] sm:$0xff] %vm1314_vm1, %v3081_v34 }
0x1422   : > { %3963 = shalt.err (!%p3960_p8)
}
0x1423   : > { %s3964_s19 = scalar_lea.hbm %s4778_s17, 128  ;;  %s3968_s13 = scalar_lea.hbm %s4997_s24, 256 }
0x1424   : > { %p3965_p10 = scmp.ne.s32.totalorder %s4778_s17, %s3964_s19  ;;  %p3969_p13 = scmp.lt.u32.totalorder %s4778_s17, %s4997_s24 }
0x1425   : > { %p3970_p0 = scmp.lt.u32.totalorder %s3968_s13, %s3964_s19  ;;  %p3972_p2 = scmp.lt.u32.totalorder %s3964_s19, %s4778_s17 }
0x1426   : > { %p3966_p11 = pnand %p3965_p10, %p4252_p3 }
0x1427   : > { %p3971_p1 = por %p3970_p0, %p3969_p13 }
0x1428   : > { %p3967_p12 = pneg %p3966_p11 }
0x1429   : > { %p3973_p4 = por %p3972_p2, %p3971_p1 }
0x142b   : > { %p3974_p5 = pnand %p3973_p4, %p3967_p12 }
0x142d   : > { %3977 = shalt.err (!%p3974_p5)
}
0x142e   : > { %3804 = dma.vmem_to_hbm [thread:$0]  (%p4252_p3), %s4780_s23, 128, %s4778_s17, %s3084_s26  }
0x142f PF: > { %s4999_s10 = sld [smem:[#allocation12_spill]]  ;;  %s5000_s8 = sld [smem:[#allocation5_spill]] }
0x1435   : > { %p3810_p6 = scmp.ge.s32.totalorder %s4999_s10, 2  ;;  %s3109_s22 = sand.u32 1, %s5000_s8  }
0x1436   : > { %s3110_s6 = scalar_lea.sflag [#allocation3], %s3109_s22 }
0x1437   : > { %p3807_p7 = pnand %p3810_p6, %p4262_p9 }
0x1439   : > { %4011 = dma.done.wait (!%p3807_p7), %s3110_s6, 128  }
0x143a   : > { %4013 = vsyncadd (!%p3807_p7), %s3110_s6, 4294967168  ;;  %s41_s0 = sadd.s32 1, %s4999_s10   ;;  %s5002_s8 = sld [smem:[#allocation6_spill]] }
0x143b   : > { %p38_p8 = scmp.ge.s32.totalorder %s41_s0, 10   ;;  %s5003_s5 = sld [smem:[#allocation7_spill]] }
0x143c   : > { %s5004_s9 = sld [smem:[#allocation17_spill]]  ;;  %s5005_s30 = sld [smem:[#allocation10_spill]] }
0x143d   : > { %s5006_s3 = sld [smem:[#allocation11_spill]]  ;;  %s5007_s6 = sld [smem:[#allocation13_spill]] }
0x143e   : > { %s5008_s10 = sld [smem:[#allocation15_spill]]  ;;  %40 = sbr.rel (!%p38_p8) target bundleno = 34 (0x22), region = 248 }
0x1445   :  { %3115 = vsyncpa [#allocation3], 1 }
0x1446   :  { %3117 = vsyncpa [#allocation3 + $0x1], 1 }

</bundles_post_ra>
